<compile_context>
chip_gen: v7x
topology: tpu7x:2x2x1
jax: 0.10.0
libtpu: 0.0.40
codegen_flags: <defaults>
</compile_context>

<pallas_src>
import numpy as np
import jax
import jax.numpy as jnp
from jax.experimental import pallas as pl
from jax.experimental.pallas import tpu as pltpu

HIDDEN = 32          # hidden_dim of the dudt MLP
N_QUAD = 10          # Gauss-Legendre quadrature order (n)
N_EVAL = N_QUAD + 1  # 10 quadrature nodes + dudt(t) itself (node u = 1.0)
_LOG2 = float(np.log(2.0))

# Fixed (non-trainable) Gauss-Legendre nodes / weights, baked in as constants.
_U_NP, _W_NP = np.polynomial.legendre.leggauss(N_QUAD)
_U_GL = [float(u) for u in _U_NP]
_W_GL = [float(w) for w in _W_NP]
# Extra evaluation point: u = 1.0 gives tau = half*1 + mid = t exactly.
_U_ALL = _U_GL + [1.0]

# Largest batch tile (multiple of 128).  Live f32 intermediates are roughly
# three (H, 11*tb) tensors ~ 4 KiB per batch element, so tb=2048 ~ 8 MiB:
# comfortably inside the 32 MiB scoped-VMEM default on every generation.
_TB_MAX = 2048


def _softplus(x):
    # torch.nn.Softplus(beta=1, threshold=20): x for x > 20 else log(1 + exp(x))
    return jnp.where(x > 20.0, x, jnp.log(1.0 + jnp.exp(jnp.minimum(x, 20.0))))


def _pick_tile(B, tb_max=_TB_MAX):
    """Largest lane-dense tile <= tb_max that still leaves >= 2 grid steps
    (feeds both v7x TensorCores; harmless on single-TC v5e/v6e)."""
    if B <= 128:
        return 128
    half = -(-B // 2)                        # cdiv(B, 2)
    tb = max(128, (half // 128) * 128)       # round down to a lane multiple
    return min(tb_max, tb)


def cdfnet_kernel(t_ref,                       # (1, TB)
                  w1_ref, b1_ref,              # (H, 1), (H, 1)
                  w2_ref, b2_ref,              # (H, H), (H, 1)
                  w3_ref, b3_ref,              # (H, 1), (1, 1)
                  o_ref):                      # (1, TB)
    tb = t_ref.shape[1]
    t = t_ref[...]                             # (1, TB): batch on lanes
    w1 = w1_ref[...]; b1 = b1_ref[...]
    w2 = w2_ref[...]; b2 = b2_ref[...]
    w3 = w3_ref[...]; b3 = b3_ref[...]

    # tau_j = (t - a)/2 * u_j + (t + a)/2 with a = -10 ; node u=1 reproduces t.
    half = (t + 10.0) * 0.5
    mid = (t - 10.0) * 0.5
    xs = [half * u + mid for u in _U_ALL]
    x = jnp.concatenate(xs, axis=1)            # (1, N_EVAL*TB), lane-dense

    # dudt MLP evaluated once for all 11 stacked inputs.
    # Hidden dim on sublanes, (node, batch) on lanes -> full-lane tanh/exp work.
    # jnp.tanh lowers to a single EUP push per vreg; matmul kept f32 (MXU is
    # not the binding slot and the bf16 variant risks the 1e-4/1e-5 tolerance).
    h = jnp.tanh(w1 * x + b1)                                                # (H, 11*TB)
    h = jnp.tanh(jnp.dot(w2, h, preferred_element_type=jnp.float32) + b2)    # (H, 11*TB)
    z = jnp.sum(w3 * h, axis=0, keepdims=True) + b3                          # (1, 11*TB)
    du_all = _softplus(z)                                                    # (1, 11*TB)

    # Quadrature: F = (t - a)/2 * sum_j w_j * dudt(tau_j)   (tiny FMAs, unrolled)
    acc = jnp.zeros_like(t)
    for j in range(N_QUAD):
        acc = acc + _W_GL[j] * du_all[:, j * tb:(j + 1) * tb]
    F = half * acc                                                           # (1, TB)
    du = du_all[:, N_QUAD * tb:N_EVAL * tb]                                  # dudt(t)

    # Stable log(1 + exp(F)) (avoids f32 exp overflow for large F; matches the
    # reference everywhere the reference itself does not overflow).
    log1pexp = jnp.maximum(F, 0.0) + jnp.log(1.0 + jnp.exp(-jnp.abs(F)))
    o_ref[...] = -(jnp.log(du) + _LOG2 + F - 2.0 * log1pexp)


def cdfnet_forward(t, params, *, tb=None):
    """t: (B,) float32 -> (B,) float32, matching CDFNet.forward."""
    w1, b1, w2, b2, w3, b3 = params
    B = t.shape[0]
    if tb is None:
        tb = _pick_tile(B)
    assert tb % 128 == 0, "tile must be lane-dense (multiple of 128)"
    G = -(-B // tb)
    Bp = G * tb

    t_p = t.astype(jnp.float32)
    if Bp != B:
        # Note: padded tail lanes (t = 0) run through log(du) too; they are
        # sliced off below and never mixed cross-lane, so any NaN/-inf there
        # is benign.
        t_p = jnp.pad(t_p, (0, Bp - B))
    t2 = t_p.reshape(1, Bp)                    # batch on the lane axis

    H = HIDDEN
    out = pl.pallas_call(
        cdfnet_kernel,
        out_shape=jax.ShapeDtypeStruct((1, Bp), jnp.float32),
        grid=(G,),
        in_specs=[
            pl.BlockSpec((1, tb), lambda i: (0, i)),    # t
            pl.BlockSpec((H, 1), lambda i: (0, 0)),     # W1      (H, 1)
            pl.BlockSpec((H, 1), lambda i: (0, 0)),     # b1      (H, 1)
            pl.BlockSpec((H, H), lambda i: (0, 0)),     # W2      (H, H)
            pl.BlockSpec((H, 1), lambda i: (0, 0)),     # b2      (H, 1)
            pl.BlockSpec((H, 1), lambda i: (0, 0)),     # W3^T    (H, 1)
            pl.BlockSpec((1, 1), lambda i: (0, 0)),     # b3      (1, 1)
        ],
        out_specs=pl.BlockSpec((1, tb), lambda i: (0, i)),
        compiler_params=pltpu.CompilerParams(dimension_semantics=("parallel",)),
    )(t2, w1, b1, w2, b2, w3, b3)
    return out.reshape(Bp)[:B]


def cdfnet_reference(t, params, u_n, w_n):
    """Pure-JAX replica of CDFNet.forward for verification."""
    w1, b1, w2, b2, w3, b3 = params            # kernel (column) layout

    def dudt(x):                               # x: (M, 1), row-major
        h = jnp.tanh(x @ w1.T + b1[:, 0])      # (M, H)
        h = jnp.tanh(h @ w2.T + b2[:, 0])      # (M, H)
        z = h @ w3 + b3[0]                     # (M, 1)
        return _softplus(z)

    tcol = t[:, None]
    a = -10.0
    half = (tcol - a) / 2.0
    tau = half * u_n[None, :] + (tcol + a) / 2.0             # (B, n)
    f = dudt(tau.reshape(-1, 1)).reshape(t.shape[0], N_QUAD)
    F = half[:, 0] * jnp.sum(w_n[None, :] * f, axis=1)       # (B,)
    du = dudt(tcol)[:, 0]
    return -(jnp.log(du) + jnp.log(2.0) + F - 2.0 * jnp.log(1.0 + jnp.exp(F)))


def init_params(key, hidden=HIDDEN):
    """Deterministic init mimicking nn.Linear defaults (U(-1/sqrt(fan_in), ..)),
    returned in the batch-on-lanes (feature-major) layout used by the kernel."""
    ks = jax.random.split(key, 6)

    def unif(k, shape, fan_in):
        bound = 1.0 / np.sqrt(fan_in)
        return jax.random.uniform(k, shape, jnp.float32, -bound, bound)

    W1 = unif(ks[0], (hidden, 1), 1);           b1 = unif(ks[1], (hidden,), 1)
    W2 = unif(ks[2], (hidden, hidden), hidden); b2 = unif(ks[3], (hidden,), hidden)
    W3 = unif(ks[4], (1, hidden), hidden);      b3 = unif(ks[5], (1,), hidden)
    return (W1,                       # (H, 1)
            b1.reshape(hidden, 1),    # (H, 1)
            W2,                       # (H, H)
            b2.reshape(hidden, 1),    # (H, 1)
            W3.T,                     # (H, 1)
            b3.reshape(1, 1))         # (1, 1)


if __name__ == "__main__":
    key = jax.random.PRNGKey(0)
    k_param, k_t = jax.random.split(key)

    params = init_params(k_param)

    # Gauss-Legendre nodes / weights (only needed by the pure-JAX reference).
    u_n = jnp.asarray(_U_NP, dtype=jnp.float32)
    w_n = jnp.asarray(_W_NP, dtype=jnp.float32)

    B = 512
    t = jax.random.normal(k_t, (B,), dtype=jnp.float32)

    # Auto-picked tile: tb=256, grid=2 (>=2 grid steps for v7x megacore).
    out = cdfnet_forward(t, params)
    out = jax.block_until_ready(out)

    ref = cdfnet_reference(t, params, u_n, w_n)
    np.testing.assert_allclose(np.asarray(out), np.asarray(ref), rtol=1e-4, atol=1e-5)

    print("KERNEL_OK")
</pallas_src>

<mosaic_0001>
module attributes {stable_mosaic.version = 11 : i64} {
  func.func @cdfnet_kernel(%arg0: i32, %arg1: memref<1x256xf32, #tpu.memory_space<vmem>>, %arg2: memref<32x1xf32, #tpu.memory_space<vmem>>, %arg3: memref<32x1xf32, #tpu.memory_space<vmem>>, %arg4: memref<32x32xf32, #tpu.memory_space<vmem>>, %arg5: memref<32x1xf32, #tpu.memory_space<vmem>>, %arg6: memref<32x1xf32, #tpu.memory_space<vmem>>, %arg7: memref<1x1xf32, #tpu.memory_space<vmem>>, %arg8: memref<1x256xf32, #tpu.memory_space<vmem>>) attributes {dimension_semantics = [#tpu.dimension_semantics<parallel>], iteration_bounds = array<i64: 2>, scalar_prefetch = 0 : i64, scratch_operands = 0 : i64, tpu.core_type = #tpu.core_type<tc>, window_params = [{transform_indices = @transform_0, window_bounds = array<i64: 1, 256>}, {pipeline_mode = #tpu.pipeline_mode<synchronous>, transform_indices = @transform_1, window_bounds = array<i64: 32, 1>}, {pipeline_mode = #tpu.pipeline_mode<synchronous>, transform_indices = @transform_2, window_bounds = array<i64: 32, 1>}, {pipeline_mode = #tpu.pipeline_mode<synchronous>, transform_indices = @transform_3, window_bounds = array<i64: 32, 32>}, {pipeline_mode = #tpu.pipeline_mode<synchronous>, transform_indices = @transform_4, window_bounds = array<i64: 32, 1>}, {pipeline_mode = #tpu.pipeline_mode<synchronous>, transform_indices = @transform_5, window_bounds = array<i64: 32, 1>}, {pipeline_mode = #tpu.pipeline_mode<synchronous>, transform_indices = @transform_6, window_bounds = array<i64: 1, 1>}, {transform_indices = @transform_7, window_bounds = array<i64: 1, 256>}]} {
    %c0 = arith.constant 0 : index
    %c0_0 = arith.constant 0 : index
    %0 = vector.load %arg1[%c0, %c0_0] : memref<1x256xf32, #tpu.memory_space<vmem>>, vector<1x256xf32>
    %c0_1 = arith.constant 0 : index
    %c0_2 = arith.constant 0 : index
    %1 = vector.load %arg2[%c0_1, %c0_2] : memref<32x1xf32, #tpu.memory_space<vmem>>, vector<32x1xf32>
    %c0_3 = arith.constant 0 : index
    %c0_4 = arith.constant 0 : index
    %2 = vector.load %arg3[%c0_3, %c0_4] : memref<32x1xf32, #tpu.memory_space<vmem>>, vector<32x1xf32>
    %c0_5 = arith.constant 0 : index
    %c0_6 = arith.constant 0 : index
    %3 = vector.load %arg4[%c0_5, %c0_6] : memref<32x32xf32, #tpu.memory_space<vmem>>, vector<32x32xf32>
    %c0_7 = arith.constant 0 : index
    %c0_8 = arith.constant 0 : index
    %4 = vector.load %arg5[%c0_7, %c0_8] : memref<32x1xf32, #tpu.memory_space<vmem>>, vector<32x1xf32>
    %c0_9 = arith.constant 0 : index
    %c0_10 = arith.constant 0 : index
    %5 = vector.load %arg6[%c0_9, %c0_10] : memref<32x1xf32, #tpu.memory_space<vmem>>, vector<32x1xf32>
    %c0_11 = arith.constant 0 : index
    %c0_12 = arith.constant 0 : index
    %6 = vector.load %arg7[%c0_11, %c0_12] : memref<1x1xf32, #tpu.memory_space<vmem>>, vector<1x1xf32>
    %cst = arith.constant 1.000000e+01 : f32
    %7 = vector.broadcast %cst : f32 to vector<1x256xf32>
    %8 = arith.addf %0, %7 : vector<1x256xf32>
    %cst_13 = arith.constant 5.000000e-01 : f32
    %9 = vector.broadcast %cst_13 : f32 to vector<1x256xf32>
    %10 = arith.mulf %8, %9 : vector<1x256xf32>
    %cst_14 = arith.constant 1.000000e+01 : f32
    %11 = vector.broadcast %cst_14 : f32 to vector<1x256xf32>
    %12 = arith.subf %0, %11 : vector<1x256xf32>
    %cst_15 = arith.constant 5.000000e-01 : f32
    %13 = vector.broadcast %cst_15 : f32 to vector<1x256xf32>
    %14 = arith.mulf %12, %13 : vector<1x256xf32>
    %cst_16 = arith.constant -0.973906517 : f32
    %15 = vector.broadcast %cst_16 : f32 to vector<1x256xf32>
    %16 = arith.mulf %10, %15 : vector<1x256xf32>
    %17 = arith.addf %16, %14 : vector<1x256xf32>
    %cst_17 = arith.constant -0.865063369 : f32
    %18 = vector.broadcast %cst_17 : f32 to vector<1x256xf32>
    %19 = arith.mulf %10, %18 : vector<1x256xf32>
    %20 = arith.addf %19, %14 : vector<1x256xf32>
    %cst_18 = arith.constant -0.679409563 : f32
    %21 = vector.broadcast %cst_18 : f32 to vector<1x256xf32>
    %22 = arith.mulf %10, %21 : vector<1x256xf32>
    %23 = arith.addf %22, %14 : vector<1x256xf32>
    %cst_19 = arith.constant -0.433395386 : f32
    %24 = vector.broadcast %cst_19 : f32 to vector<1x256xf32>
    %25 = arith.mulf %10, %24 : vector<1x256xf32>
    %26 = arith.addf %25, %14 : vector<1x256xf32>
    %cst_20 = arith.constant -0.148874342 : f32
    %27 = vector.broadcast %cst_20 : f32 to vector<1x256xf32>
    %28 = arith.mulf %10, %27 : vector<1x256xf32>
    %29 = arith.addf %28, %14 : vector<1x256xf32>
    %cst_21 = arith.constant 0.148874342 : f32
    %30 = vector.broadcast %cst_21 : f32 to vector<1x256xf32>
    %31 = arith.mulf %10, %30 : vector<1x256xf32>
    %32 = arith.addf %31, %14 : vector<1x256xf32>
    %cst_22 = arith.constant 0.433395386 : f32
    %33 = vector.broadcast %cst_22 : f32 to vector<1x256xf32>
    %34 = arith.mulf %10, %33 : vector<1x256xf32>
    %35 = arith.addf %34, %14 : vector<1x256xf32>
    %cst_23 = arith.constant 0.679409563 : f32
    %36 = vector.broadcast %cst_23 : f32 to vector<1x256xf32>
    %37 = arith.mulf %10, %36 : vector<1x256xf32>
    %38 = arith.addf %37, %14 : vector<1x256xf32>
    %cst_24 = arith.constant 0.865063369 : f32
    %39 = vector.broadcast %cst_24 : f32 to vector<1x256xf32>
    %40 = arith.mulf %10, %39 : vector<1x256xf32>
    %41 = arith.addf %40, %14 : vector<1x256xf32>
    %cst_25 = arith.constant 0.973906517 : f32
    %42 = vector.broadcast %cst_25 : f32 to vector<1x256xf32>
    %43 = arith.mulf %10, %42 : vector<1x256xf32>
    %44 = arith.addf %43, %14 : vector<1x256xf32>
    %cst_26 = arith.constant 1.000000e+00 : f32
    %45 = vector.broadcast %cst_26 : f32 to vector<1x256xf32>
    %46 = arith.mulf %10, %45 : vector<1x256xf32>
    %47 = arith.addf %46, %14 : vector<1x256xf32>
    %48 = tpu.concatenate %17, %20, %23, %26, %29, %32, %35, %38, %41, %44, %47 in 1 : vector<1x256xf32>, vector<1x256xf32>, vector<1x256xf32>, vector<1x256xf32>, vector<1x256xf32>, vector<1x256xf32>, vector<1x256xf32>, vector<1x256xf32>, vector<1x256xf32>, vector<1x256xf32>, vector<1x256xf32> -> vector<1x2816xf32>
    %49 = vector.broadcast %1 : vector<32x1xf32> to vector<32x2816xf32>
    %50 = vector.broadcast %48 : vector<1x2816xf32> to vector<32x2816xf32>
    %51 = arith.mulf %49, %50 : vector<32x2816xf32>
    %52 = vector.broadcast %2 : vector<32x1xf32> to vector<32x2816xf32>
    %53 = arith.addf %51, %52 : vector<32x2816xf32>
    %54 = math.tanh %53 : vector<32x2816xf32>
    %cst_27 = arith.constant dense<0.000000e+00> : vector<32x2816xf32>
    %55 = tpu.matmul %3, %54, %cst_27 {dimension_numbers = #tpu.dot_dimension_numbers<[1], [0], [0], [1], [0, 0, 1, 1], [], []>} : vector<32x32xf32>, vector<32x2816xf32>, vector<32x2816xf32> -> vector<32x2816xf32>
    %56 = vector.broadcast %4 : vector<32x1xf32> to vector<32x2816xf32>
    %57 = arith.addf %55, %56 : vector<32x2816xf32>
    %58 = math.tanh %57 : vector<32x2816xf32>
    %59 = vector.broadcast %5 : vector<32x1xf32> to vector<32x2816xf32>
    %60 = arith.mulf %59, %58 : vector<32x2816xf32>
    %cst_28 = arith.constant dense<0.000000e+00> : vector<2816xf32>
    %61 = vector.multi_reduction <add>, %60, %cst_28 [0] : vector<32x2816xf32> to vector<2816xf32>
    %62 = vector.shape_cast %61 : vector<2816xf32> to vector<1x2816xf32>
    %63 = vector.broadcast %6 : vector<1x1xf32> to vector<1x2816xf32>
    %64 = arith.addf %62, %63 : vector<1x2816xf32>
    %cst_29 = arith.constant 2.000000e+01 : f32
    %65 = vector.broadcast %cst_29 : f32 to vector<1x2816xf32>
    %66 = arith.cmpf ogt, %64, %65 : vector<1x2816xf32>
    %cst_30 = arith.constant 2.000000e+01 : f32
    %67 = vector.broadcast %cst_30 : f32 to vector<1x2816xf32>
    %68 = arith.minimumf %64, %67 : vector<1x2816xf32>
    %69 = math.exp %68 : vector<1x2816xf32>
    %cst_31 = arith.constant 1.000000e+00 : f32
    %70 = vector.broadcast %cst_31 : f32 to vector<1x2816xf32>
    %71 = arith.addf %70, %69 : vector<1x2816xf32>
    %72 = math.log %71 : vector<1x2816xf32>
    %73 = arith.select %66, %64, %72 : vector<1x2816xi1>, vector<1x2816xf32>
    %cst_32 = arith.constant 0.000000e+00 : f32
    %74 = vector.broadcast %cst_32 : f32 to vector<1x256xf32>
    %75 = vector.extract_strided_slice %73 {offsets = [0, 0], sizes = [1, 256], strides = [1, 1]} : vector<1x2816xf32> to vector<1x256xf32>
    %cst_33 = arith.constant 0.0666713416 : f32
    %76 = vector.broadcast %cst_33 : f32 to vector<1x256xf32>
    %77 = arith.mulf %76, %75 : vector<1x256xf32>
    %78 = arith.addf %74, %77 : vector<1x256xf32>
    %79 = vector.extract_strided_slice %73 {offsets = [0, 256], sizes = [1, 256], strides = [1, 1]} : vector<1x2816xf32> to vector<1x256xf32>
    %cst_34 = arith.constant 0.149451345 : f32
    %80 = vector.broadcast %cst_34 : f32 to vector<1x256xf32>
    %81 = arith.mulf %80, %79 : vector<1x256xf32>
    %82 = arith.addf %78, %81 : vector<1x256xf32>
    %83 = vector.extract_strided_slice %73 {offsets = [0, 512], sizes = [1, 256], strides = [1, 1]} : vector<1x2816xf32> to vector<1x256xf32>
    %cst_35 = arith.constant 0.219086364 : f32
    %84 = vector.broadcast %cst_35 : f32 to vector<1x256xf32>
    %85 = arith.mulf %84, %83 : vector<1x256xf32>
    %86 = arith.addf %82, %85 : vector<1x256xf32>
    %87 = vector.extract_strided_slice %73 {offsets = [0, 768], sizes = [1, 256], strides = [1, 1]} : vector<1x2816xf32> to vector<1x256xf32>
    %cst_36 = arith.constant 0.269266725 : f32
    %88 = vector.broadcast %cst_36 : f32 to vector<1x256xf32>
    %89 = arith.mulf %88, %87 : vector<1x256xf32>
    %90 = arith.addf %86, %89 : vector<1x256xf32>
    %91 = vector.extract_strided_slice %73 {offsets = [0, 1024], sizes = [1, 256], strides = [1, 1]} : vector<1x2816xf32> to vector<1x256xf32>
    %cst_37 = arith.constant 0.29552424 : f32
    %92 = vector.broadcast %cst_37 : f32 to vector<1x256xf32>
    %93 = arith.mulf %92, %91 : vector<1x256xf32>
    %94 = arith.addf %90, %93 : vector<1x256xf32>
    %95 = vector.extract_strided_slice %73 {offsets = [0, 1280], sizes = [1, 256], strides = [1, 1]} : vector<1x2816xf32> to vector<1x256xf32>
    %cst_38 = arith.constant 0.29552424 : f32
    %96 = vector.broadcast %cst_38 : f32 to vector<1x256xf32>
    %97 = arith.mulf %96, %95 : vector<1x256xf32>
    %98 = arith.addf %94, %97 : vector<1x256xf32>
    %99 = vector.extract_strided_slice %73 {offsets = [0, 1536], sizes = [1, 256], strides = [1, 1]} : vector<1x2816xf32> to vector<1x256xf32>
    %cst_39 = arith.constant 0.269266725 : f32
    %100 = vector.broadcast %cst_39 : f32 to vector<1x256xf32>
    %101 = arith.mulf %100, %99 : vector<1x256xf32>
    %102 = arith.addf %98, %101 : vector<1x256xf32>
    %103 = vector.extract_strided_slice %73 {offsets = [0, 1792], sizes = [1, 256], strides = [1, 1]} : vector<1x2816xf32> to vector<1x256xf32>
    %cst_40 = arith.constant 0.219086364 : f32
    %104 = vector.broadcast %cst_40 : f32 to vector<1x256xf32>
    %105 = arith.mulf %104, %103 : vector<1x256xf32>
    %106 = arith.addf %102, %105 : vector<1x256xf32>
    %107 = vector.extract_strided_slice %73 {offsets = [0, 2048], sizes = [1, 256], strides = [1, 1]} : vector<1x2816xf32> to vector<1x256xf32>
    %cst_41 = arith.constant 0.149451345 : f32
    %108 = vector.broadcast %cst_41 : f32 to vector<1x256xf32>
    %109 = arith.mulf %108, %107 : vector<1x256xf32>
    %110 = arith.addf %106, %109 : vector<1x256xf32>
    %111 = vector.extract_strided_slice %73 {offsets = [0, 2304], sizes = [1, 256], strides = [1, 1]} : vector<1x2816xf32> to vector<1x256xf32>
    %cst_42 = arith.constant 0.0666713416 : f32
    %112 = vector.broadcast %cst_42 : f32 to vector<1x256xf32>
    %113 = arith.mulf %112, %111 : vector<1x256xf32>
    %114 = arith.addf %110, %113 : vector<1x256xf32>
    %115 = arith.mulf %10, %114 : vector<1x256xf32>
    %116 = vector.extract_strided_slice %73 {offsets = [0, 2560], sizes = [1, 256], strides = [1, 1]} : vector<1x2816xf32> to vector<1x256xf32>
    %cst_43 = arith.constant 0.000000e+00 : f32
    %117 = vector.broadcast %cst_43 : f32 to vector<1x256xf32>
    %118 = arith.maximumf %115, %117 : vector<1x256xf32>
    %119 = math.absf %115 : vector<1x256xf32>
    %cst_44 = arith.constant 0.000000e+00 : f32
    %120 = vector.broadcast %cst_44 : f32 to vector<1x256xf32>
    %121 = arith.subf %120, %119 : vector<1x256xf32>
    %122 = math.exp %121 : vector<1x256xf32>
    %cst_45 = arith.constant 1.000000e+00 : f32
    %123 = vector.broadcast %cst_45 : f32 to vector<1x256xf32>
    %124 = arith.addf %123, %122 : vector<1x256xf32>
    %125 = math.log %124 : vector<1x256xf32>
    %126 = arith.addf %118, %125 : vector<1x256xf32>
    %127 = math.log %116 : vector<1x256xf32>
    %cst_46 = arith.constant 0.693147182 : f32
    %128 = vector.broadcast %cst_46 : f32 to vector<1x256xf32>
    %129 = arith.addf %127, %128 : vector<1x256xf32>
    %130 = arith.addf %129, %115 : vector<1x256xf32>
    %cst_47 = arith.constant 2.000000e+00 : f32
    %131 = vector.broadcast %cst_47 : f32 to vector<1x256xf32>
    %132 = arith.mulf %131, %126 : vector<1x256xf32>
    %133 = arith.subf %130, %132 : vector<1x256xf32>
    %cst_48 = arith.constant 0.000000e+00 : f32
    %134 = vector.broadcast %cst_48 : f32 to vector<1x256xf32>
    %135 = arith.subf %134, %133 : vector<1x256xf32>
    %c0_49 = arith.constant 0 : index
    %c0_50 = arith.constant 0 : index
    %136 = vector.load %arg8[%c0_49, %c0_50] : memref<1x256xf32, #tpu.memory_space<vmem>>, vector<1x256xf32>
    tpu.vector_store %arg8[%c0_49, %c0_50], %135 {strides = array<i32>} : memref<1x256xf32, #tpu.memory_space<vmem>>, vector<1x256xf32>,
    return
  }
  func.func @transform_0(%arg0: i32) -> (i32, i32) {
    %c0_i32 = arith.constant 0 : i32
    %c0_i32_0 = arith.constant 0 : i32
    return %c0_i32, %arg0 : i32, i32
  }
  func.func @transform_1(%arg0: i32) -> (i32, i32) {
    %c0_i32 = arith.constant 0 : i32
    %c0_i32_0 = arith.constant 0 : i32
    %c0_i32_1 = arith.constant 0 : i32
    return %c0_i32, %c0_i32_0 : i32, i32
  }
  func.func @transform_2(%arg0: i32) -> (i32, i32) {
    %c0_i32 = arith.constant 0 : i32
    %c0_i32_0 = arith.constant 0 : i32
    %c0_i32_1 = arith.constant 0 : i32
    return %c0_i32, %c0_i32_0 : i32, i32
  }
  func.func @transform_3(%arg0: i32) -> (i32, i32) {
    %c0_i32 = arith.constant 0 : i32
    %c0_i32_0 = arith.constant 0 : i32
    %c0_i32_1 = arith.constant 0 : i32
    return %c0_i32, %c0_i32_0 : i32, i32
  }
  func.func @transform_4(%arg0: i32) -> (i32, i32) {
    %c0_i32 = arith.constant 0 : i32
    %c0_i32_0 = arith.constant 0 : i32
    %c0_i32_1 = arith.constant 0 : i32
    return %c0_i32, %c0_i32_0 : i32, i32
  }
  func.func @transform_5(%arg0: i32) -> (i32, i32) {
    %c0_i32 = arith.constant 0 : i32
    %c0_i32_0 = arith.constant 0 : i32
    %c0_i32_1 = arith.constant 0 : i32
    return %c0_i32, %c0_i32_0 : i32, i32
  }
  func.func @transform_6(%arg0: i32) -> (i32, i32) {
    %c0_i32 = arith.constant 0 : i32
    %c0_i32_0 = arith.constant 0 : i32
    %c0_i32_1 = arith.constant 0 : i32
    return %c0_i32, %c0_i32_0 : i32, i32
  }
  func.func @transform_7(%arg0: i32) -> (i32, i32) {
    %c0_i32 = arith.constant 0 : i32
    %c0_i32_0 = arith.constant 0 : i32
    return %c0_i32, %arg0 : i32, i32
  }
}

</mosaic_0001>

<bundles_post_ra>
// kernel: tpu_custom_call.1
= control target key start
LH: loop header
LB: loop body
LE: loop exit
PB: predicated region body
PF: predicated region fallthrough
CT: control target
= control target key end

     0   :  { %s4809_s0 = inlined_call_operand.vmem [shape: f32[1,512], index: 0, kind: input, shape index: {}]   ;;  %s4810_s1 = inlined_call_operand.vmem [shape: f32[32,1], index: 1, kind: input, shape index: {}]   ;;  %s4811_s2 = inlined_call_operand.vmem [shape: f32[32,1], index: 2, kind: input, shape index: {}]   ;;  %s4812_s3 = inlined_call_operand.vmem [shape: f32[32,32], index: 3, kind: input, shape index: {}]   ;;  %s4813_s4 = inlined_call_operand.vmem [shape: f32[32,1], index: 4, kind: input, shape index: {}]   ;;  %s4814_s5 = inlined_call_operand.vmem [shape: f32[32,1], index: 5, kind: input, shape index: {}]   ;;  %s4815_s6 = inlined_call_operand.<no memory space> [shape: f32[1,1], index: 6, kind: input, shape index: {}]   ;;  %s4816_s7 = inlined_call_operand.hbm [shape: f32[1,512], index: 7, kind: output, shape index: {}]  }
   0x1   :  { %v12_v0 = vstv %s4815_s6 }
   0x2   :  { %13 = vst [vmem:[#allocation2] sm:$0x1] %v12_v0 }
   0x3   :  { %14 = vsyncpa [#allocation4], 0 }
   0x4   :  { %16 = vsyncpa [#allocation4 + $0x1], 0  ;;  %s3401_s26 = smov 0   ;;  %s3403_s27 = smov 0  }
   0x5   :  { %s3405_s28 = smov 0   ;;  %s3407_s29 = smov 0  }
   0x6 LB: > { %s3422_s6 = sadd.s32 4294967295, %s3352_s29   ;;  %s2649_s30 = sadd.s32 4294967294, %s3352_s29   ;;  %s3352_s29 = sphi %s3407_s29, %s4868_s29   ;;  %s3348_s28 = sphi %s3405_s28, %s4867_s28   ;;  %s3344_s27 = sphi %s3403_s27, %s4866_s27   ;;  %s3340_s26 = sphi %s3401_s26, %s4865_s26  }
   0x7   : > { %s3426_s8 = sadd.s32 1, %s3352_s29   ;;  %s181_s9 = sadd.s32 1, %s3348_s28 }
   0x8   : > { %s178_s10 = ssub.s32 %s3352_s29, %s3426_s8  ;;  %p191_p0 = scmp.ne.s32.totalorder %s3348_s28, %s3344_s27 }
   0x9   : > { %p179_p1 = scmp.eq.s32.totalorder %s178_s10, 0  ;;  %p192_p2 = scmp.eq.s32.totalorder %s3422_s6, 1 }
   0xa   : > { %p197_p3 = scmp.ne.s32.totalorder %s3344_s27, %s3340_s26  ;;  %p198_p4 = scmp.eq.s32.totalorder %s2649_s30, 1 }
   0xb   : > { %s3437_s11 = scalar_select %p179_p1, %s3348_s28, %s181_s9  }
   0xc   : > { %p3439_p5 = por %p192_p2, %p191_p0  ;;  %p3443_p6 = por %p198_p4, %p197_p3 }
   0xd   : > { %p2652_p7 = scmp.ge.s32.totalorder %s3352_s29, 1  ;;  %p242_p8 = scmp.lt.s32.totalorder %s3352_s29, 3 }
   0xf   : > { %p243_p9 = pnand %p2652_p7, %p242_p8 }
  0x11   : > { %246 = sbr.rel (%p243_p9) target bundleno = 710 (0x2c6), region = 48 }
  0x18   : > { %v284_v1 = vld [vmem:[%s4811_s2] sm:$0xff]  ;;  %v3354_v3 = vmov 0   ;;  %v285_v4 = vld [vmem:[%s4811_s2 + $0x8] sm:$0xff]  ;;  %v283_v6 = vld [vmem:[%s4810_s1 + $0x18] sm:$0xff]  ;;  %v3355_v19 = vmov 0.0   ;;  %s2654_s16 = sshll.u32 %s3422_s6, 1  ;;  %v4817_v24 = vlaneseq }
  0x19   : > { %v280_v2 = vld [vmem:[%s4810_s1] sm:$0xff]  ;;  %2841 = vset.pattern.permute.xlu1 %v3354_v3  ;;  %2840 = vset.pattern.permute.xlu0 %v3354_v3  ;;  %v281_v5 = vld [vmem:[%s4810_s1 + $0x8] sm:$0xff]  ;;  %v282_v7 = vld [vmem:[%s4810_s1 + $0x10] sm:$0xff]  ;;  %p274_p10 = scmp.lt.s32.totalorder %s2654_s16, 3  ;;  %vm859_vm0 = vcmask 261120   ;;  %s270_s10 = sand.u32 1, %s3344_s27  }
  0x1a   : > { %645 = vperm.xlu1 %2841, %v284_v1   ;;  %449 = vperm.xlu0 %2840, %v280_v2   ;;  %v287_v8 = vld [vmem:[%s4811_s2 + $0x18] sm:$0xff]  ;;  %v286_v9 = vld [vmem:[%s4811_s2 + $0x10] sm:$0xff]  ;;  %v293_v10 = vld [vmem:[%s4813_s4 + $0x8] sm:$0xff]  ;;  %v3507_v27 = vshrl.u32 %v4817_v24, 7  ;;  %s2653_s14 = sshll.u32 %s270_s10, 1  ;;  %s2705_s15 = sshll.u32 %s3422_s6, 5 }
  0x1b   : > { %v292_v11 = vld [vmem:[%s4813_s4] sm:$0xff]  ;;  %v295_v12 = vld [vmem:[%s4813_s4 + $0x18] sm:$0xff]  ;;  %v294_v13 = vld [vmem:[%s4813_s4 + $0x10] sm:$0xff]  ;;  %936 = vmatprep.mubr.f32.mxu0 %v3355_v19  ;;  %948 = vmatprep.mubr.f32.mxu1 %v3355_v19  ;;  %s4870_s16 = smov (!%p274_p10, %s2654_s16), 3  ;;  %s4767_s20 = scalar_lea.hbm %s4816_s7, %s2705_s15 }
  0x1c   : > { %v297_v14 = vld [vmem:[%s4814_s5 + $0x8] sm:$0xff]  ;;  %v296_v15 = vld [vmem:[%s4814_s5] sm:$0xff]  ;;  %v299_v16 = vld [vmem:[%s4814_s5 + $0x18] sm:$0xff]  ;;  %s276_s19 = scalar_lea.vmem %s4809_s0, %s4870_s16  ;;  %4827 = vst [vmem:[#allocation7_spill] sm:$0xff] %v3507_v27  ;;  %v3513_v32 = vsub.s32 0, %v3507_v27  ;;  %v3516_v33 = vsub.s32 1, %v3507_v27 }
  0x1d   : > { %v298_v17 = vld [vmem:[%s4814_s5 + $0x10] sm:$0xff]  ;;  %v300_v18 = vld [vmem:[#allocation2] sm:$0x1]  ;;  %s272_s16 = scalar_lea.vmem [#allocation3], %s2653_s14  ;;  %s2579_s21 = scalar_lea.sflag [#allocation4], %s270_s10 }
  0x1e   : > { %650 = vperm.xlu1 %2841, %v285_v4   ;;  %454 = vperm.xlu0 %2840, %v281_v5   ;;  %v279_v20 = vld [vmem:[%s276_s19] sm:$0x3]  ;;  %4828 = vst [vmem:[#allocation8_spill] sm:$0xff] %v3513_v32  ;;  %4829 = vst [vmem:[#allocation9_spill] sm:$0xff] %v3516_v33  ;;  %s2593_s17 = sshll.u32 %s272_s16, 4  ;;  %s3357_s6 = smov [#allocation3]   ;;  %s4769_s17 = int_to_ptr.vmem [resolvable:$true] %s2593_s17 }
  0x1f   : > { %v301_v21 = vadd.f32 10.0, %v279_v20  ;;  %v2655_v23 = vadd.f32 -10.0, %v279_v20  ;;  %s3290_s22 = scalar_lea.vmem %s4769_s17, 32  ;;  %s3294_s23 = sshll.u32 %s3357_s6, 4  ;;  %s3295_s23 = int_to_ptr.vmem [resolvable:$false] %s3294_s23 }
  0x20   : > { %p3291_p11 = scmp.ne.s32.totalorder %s4769_s17, %s3290_s22  ;;  %s3296_s24 = scalar_lea.vmem %s3295_s23, 64 }
  0x21   : > { %v3503_v22 = vmul.f32 0.5, %v301_v21  ;;  %v304_v25 = vmul.f32 0.5, %v2655_v23  ;;  %p3297_p0 = scmp.lt.s32.totalorder %s4769_s17, %s3295_s23  ;;  %p3298_p1 = scmp.lt.s32.totalorder %s3296_s24, %s3290_s22 }
  0x22   : > { %464 = vperm.xlu1 %2841, %v283_v6   ;;  %459 = vperm.xlu0 %2840, %v282_v7   ;;  %p3292_p12 = pnand %p3291_p11, %p3439_p5 }
  0x23   : > { %4826 = vst [vmem:[#allocation6_spill] sm:$0xff] %v3503_v22  ;;  %v305_v26 = vmul.f32 -0.9739065, %v3503_v22  ;;  %v307_v28 = vmul.f32 -0.86506337, %v3503_v22  ;;  %v3562_v6 = vadd.f32 %v304_v25, %v3503_v22  ;;  %p3299_p2 = por %p3298_p1, %p3297_p0 }
  0x24   : > { %v309_v29 = vmul.f32 -0.67940956, %v3503_v22  ;;  %v311_v30 = vmul.f32 -0.4333954, %v3503_v22  ;;  %v313_v34 = vmul.f32 -0.14887434, %v3503_v22  ;;  %p3293_p13 = pneg %p3292_p12 }
  0x25   : > { %v306_v31 = vadd.f32 %v305_v26, %v304_v25  ;;  %v308_v35 = vadd.f32 %v307_v28, %v304_v25  ;;  %v315_v37 = vmul.f32 0.14887434, %v3503_v22  ;;  %v317_v41 = vmul.f32 0.4333954, %v3503_v22 }
  0x26   : > { %660 = vperm.xlu1 %2841, %v287_v8   ;;  %655 = vperm.xlu0 %2840, %v286_v9   ;;  %v310_v36 = vadd.f32 %v309_v29, %v304_v25  ;;  %v312_v38 = vadd.f32 %v311_v30, %v304_v25  ;;  %v314_v42 = vadd.f32 %v313_v34, %v304_v25  ;;  %v319_v43 = vmul.f32 0.67940956, %v3503_v22  ;;  %p3300_p3 = pnand %p3299_p2, %p3293_p13 }
  0x27   : > { %v334_v39 = vrot.slane %v306_v31, %v3516_v33  ;;  %v330_v40 = vrot.slane %v306_v31, %v3513_v32  ;;  %v345_v44 = vrot.slane %v308_v35, %v3516_v33  ;;  %v316_v46 = vadd.f32 %v315_v37, %v304_v25 }
  0x28   : > { %v356_v45 = vrot.slane %v310_v36, %v3516_v33  ;;  %v321_v47 = vmul.f32 0.86506337, %v3503_v22  ;;  %v341_v48 = vrot.slane %v308_v35, %v3513_v32  ;;  %v352_v49 = vrot.slane %v310_v36, %v3513_v32 }
  0x29   : > { %v367_v50 = vrot.slane %v312_v38, %v3516_v33  ;;  %v323_v51 = vmul.f32 0.9739065, %v3503_v22  ;;  %v3532_v52 = vrot.slane %v334_v39, %v3513_v32  ;;  %v3535_v53 = vrot.slane %v330_v40, %v3513_v32 }
  0x2a   : > { %846 = vperm.xlu1 %2841, %v293_v10   ;;  %841 = vperm.xlu0 %2840, %v292_v11   ;;  %v318_v54 = vadd.f32 %v317_v41, %v304_v25  ;;  %v378_v55 = vrot.slane %v314_v42, %v3516_v33  ;;  %v363_v56 = vrot.slane %v312_v38, %v3513_v32 }
  0x2b   : > { %v374_v57 = vrot.slane %v314_v42, %v3513_v32  ;;  %v320_v58 = vadd.f32 %v319_v43, %v304_v25  ;;  %v3541_v59 = vrot.slane %v345_v44, %v3513_v32  ;;  %v3544_v60 = vrot.slane %v356_v45, %v3513_v32 }
  0x2c   : > { %v389_v61 = vrot.slane %v316_v46, %v3516_v33  ;;  %v322_v62 = vadd.f32 %v321_v47, %v304_v25  ;;  %v3548_v63 = vrot.slane %v341_v48, %v3513_v32  ;;  %v3551_v0 = vrot.slane %v352_v49, %v3513_v32 }
  0x2d   : > { %v3554_v1 = vrot.slane %v367_v50, %v3513_v32  ;;  %v3556_v2 = vadd.f32 %v323_v51, %v304_v25  ;;  %v400_v3 = vrot.slane %v318_v54, %v3516_v33  ;;  %v385_v4 = vrot.slane %v316_v46, %v3513_v32 }
  0x2e   : > { %856 = vperm.xlu1 %2841, %v295_v12   ;;  %851 = vperm.xlu0 %2840, %v294_v13   ;;  %v396_v5 = vrot.slane %v318_v54, %v3513_v32  ;;  %v3565_v7 = vrot.slane %v378_v55, %v3513_v32  ;;  %v3568_v8 = vrot.slane %v363_v56, %v3513_v32 }
  0x2f   : > { %v3571_v9 = vrot.slane %v374_v57, %v3513_v32  ;;  %v411_v10 = vrot.slane %v320_v58, %v3516_v33  ;;  %v3579_v13 = vrot.slane %v389_v61, %v3513_v32  ;;  %v433_v21 = vrot.slane %v3556_v2, %v3516_v33 }
  0x30   : > { %v3593_v23 = vrot.slane %v400_v3, %v3513_v32  ;;  %v3596_v25 = vrot.slane %v385_v4, %v3513_v32  ;;  %v3599_v26 = vrot.slane %v396_v5, %v3513_v32  ;;  %v444_v28 = vrot.slane %v3562_v6, %v3516_v33 }
  0x31   : > { %v3608_v34 = vrot.slane %v411_v10, %v3513_v32  ;;  %v3631_v44 = vrot.slane %v433_v21, %v3513_v32  ;;  %v429_v56 = vrot.slane %v3556_v2, %v3513_v32  ;;  %v440_v57 = vrot.slane %v3562_v6, %v3513_v32 }
  0x32   : > { %1946 = vperm.xlu1 %2841, %v297_v14   ;;  %1941 = vperm.xlu0 %2840, %v296_v15   ;;  %v422_v14 = vrot.slane %v322_v62, %v3516_v33  ;;  %v407_v15 = vrot.slane %v320_v58, %v3513_v32  ;;  %v3638_v47 = vrot.slane %v444_v28, %v3513_v32 }
  0x34   : > { %v3616_v38 = vrot.slane %v422_v14, %v3513_v32  ;;  %v3619_v39 = vrot.slane %v407_v15, %v3513_v32 }
  0x36   : > { %1956 = vperm.xlu1 %2841, %v299_v16   ;;  %1951 = vperm.xlu0 %2840, %v298_v17   ;;  %v418_v16 = vrot.slane %v322_v62, %v3513_v32 }
  0x38   : > { %v3622_v40 = vrot.slane %v418_v16, %v3513_v32 }
  0x3a   : > { %2247 = vperm.xlu0 %2840, %v300_v18  }
  0x99   : > { %v3574_v11 = vpop.permute.xlu1 %645  ;;  %v3576_v12 = vpop.permute.xlu0 %449 }
  0x9a   : > { %v556_v17 = vmul.f32 %v3532_v52, %v3576_v12  ;;  %v555_v18 = vmul.f32 %v3535_v53, %v3576_v12  ;;  %v558_v20 = vmul.f32 %v3541_v59, %v3576_v12  ;;  %v560_v31 = vmul.f32 %v3544_v60, %v3576_v12 }
  0x9b   : > { %v557_v46 = vmul.f32 %v3548_v63, %v3576_v12  ;;  %v559_v61 = vmul.f32 %v3551_v0, %v3576_v12  ;;  %v562_v62 = vmul.f32 %v3554_v1, %v3576_v12 }
  0x9c   : > { %v664_v29 = vadd.f32 %v3574_v11, %v556_v17  ;;  %v663_v30 = vadd.f32 %v3574_v11, %v555_v18  ;;  %v666_v37 = vadd.f32 %v3574_v11, %v558_v20  ;;  %v668_v50 = vadd.f32 %v3574_v11, %v560_v31 }
  0x9d   : > { %v3610_v35 = vpop.permute.xlu1 %650  ;;  %v3612_v36 = vpop.permute.xlu0 %454  ;;  %v665_v4 = vadd.f32 %v3574_v11, %v557_v46  ;;  %v3675_v17 = vrot.slane %v429_v56, %v3513_v32  ;;  %v3678_v18 = vrot.slane %v440_v57, %v3513_v32 }
  0x9e   : > { %v578_v41 = vmul.f32 %v3532_v52, %v3612_v36  ;;  %v577_v42 = vmul.f32 %v3535_v53, %v3612_v36  ;;  %v580_v43 = vmul.f32 %v3541_v59, %v3612_v36  ;;  %2842 = vtanh.f32 %v664_v29 }
  0x9f   : > { %v582_v45 = vmul.f32 %v3544_v60, %v3612_v36  ;;  %2844 = vtanh.f32 %v663_v30  ;;  %v579_v3 = vmul.f32 %v3548_v63, %v3612_v36  ;;  %v581_v2 = vmul.f32 %v3551_v0, %v3612_v36 }
  0xa0   : > { %v686_v48 = vadd.f32 %v3610_v35, %v578_v41  ;;  %v685_v49 = vadd.f32 %v3610_v35, %v577_v42  ;;  %v688_v55 = vadd.f32 %v3610_v35, %v580_v43  ;;  %2846 = vtanh.f32 %v666_v37 }
  0xa1   : > { %v3643_v51 = vpop.permute.xlu1 %464  ;;  %v3645_v54 = vpop.permute.xlu0 %459  ;;  %v690_v58 = vadd.f32 %v3610_v35, %v582_v45  ;;  %v667_v29 = vadd.f32 %v3574_v11, %v559_v61  ;;  %v687_v30 = vadd.f32 %v3610_v35, %v579_v3  ;;  %v689_v31 = vadd.f32 %v3610_v35, %v581_v2 }
  0xa2   : > { %2848 = vtanh.f32 %v686_v48  ;;  %v600_v5 = vmul.f32 %v3532_v52, %v3645_v54  ;;  %v622_v6 = vmul.f32 %v3532_v52, %v3643_v51  ;;  %v599_v10 = vmul.f32 %v3535_v53, %v3645_v54 }
  0xa3   : > { %2850 = vtanh.f32 %v685_v49  ;;  %v621_v16 = vmul.f32 %v3535_v53, %v3643_v51  ;;  %v564_v53 = vmul.f32 %v3565_v7, %v3576_v12  ;;  %v3690_v37 = vadd.f32 %v3574_v11, %v562_v62 }
  0xa4   : > { %2852 = vtanh.f32 %v668_v50  ;;  %v602_v42 = vmul.f32 %v3541_v59, %v3645_v54  ;;  %v624_v43 = vmul.f32 %v3541_v59, %v3643_v51  ;;  %v604_v45 = vmul.f32 %v3544_v60, %v3645_v54 }
  0xa5   : > { %v3668_v14 = vpop.permute.xlu1 %660  ;;  %v3670_v15 = vpop.permute.xlu0 %655  ;;  %2854 = vtanh.f32 %v688_v55  ;;  %v626_v48 = vmul.f32 %v3544_v60, %v3643_v51  ;;  %v601_v49 = vmul.f32 %v3548_v63, %v3645_v54  ;;  %v623_v50 = vmul.f32 %v3548_v63, %v3643_v51 }
  0xa6   : > { %v708_v52 = vadd.f32 %v3670_v15, %v600_v5  ;;  %v730_v20 = vadd.f32 %v3668_v14, %v622_v6  ;;  %v707_v21 = vadd.f32 %v3670_v15, %v599_v10  ;;  %2856 = vtanh.f32 %v690_v58 }
  0xa7   : > { %v729_v28 = vadd.f32 %v3668_v14, %v621_v16  ;;  %2858 = vtanh.f32 %v665_v4  ;;  %v710_v56 = vadd.f32 %v3670_v15, %v602_v42  ;;  %v732_v59 = vadd.f32 %v3668_v14, %v624_v43 }
  0xa8   : > { %2860 = vtanh.f32 %v708_v52  ;;  %v2843_v41 = vpop.eup %2842  ;;  %v603_v57 = vmul.f32 %v3551_v0, %v3645_v54  ;;  %v712_v60 = vadd.f32 %v3670_v15, %v604_v45  ;;  %v734_v61 = vadd.f32 %v3668_v14, %v626_v48 }
  0xa9   : > { %2862 = vtanh.f32 %v730_v20  ;;  %v2845_v46 = vpop.eup %2844  ;;  %v584_v62 = vmul.f32 %v3554_v1, %v3612_v36  ;;  %v586_v4 = vmul.f32 %v3565_v7, %v3612_v36  ;;  %v561_v2 = vmul.f32 %v3568_v8, %v3576_v12 }
  0xaa   : > { %2864 = vtanh.f32 %v707_v21  ;;  %v3704_v55 = vpop.eup %2846  ;;  %v583_v10 = vmul.f32 %v3568_v8, %v3612_v36  ;;  %v563_v16 = vmul.f32 %v3571_v9, %v3576_v12  ;;  %v709_v20 = vadd.f32 %v3670_v15, %v601_v49 }
  0xab   : > { %2866 = vtanh.f32 %v729_v28  ;;  %v625_v21 = vmul.f32 %v3551_v0, %v3643_v51  ;;  %v585_v28 = vmul.f32 %v3571_v9, %v3612_v36  ;;  %v692_v0 = vadd.f32 %v3610_v35, %v584_v62 }
  0xac   : > { %v2849_v58 = vpop.eup %2848  ;;  %2868 = vtanh.f32 %v687_v30  ;;  %v731_v30 = vadd.f32 %v3668_v14, %v623_v50  ;;  %v694_v45 = vadd.f32 %v3610_v35, %v586_v4  ;;  %v669_v48 = vadd.f32 %v3574_v11, %v561_v2 }
  0xad   : > { %v2851_v63 = vpop.eup %2850  ;;  %v2706_v3 = vpack.c.bf16 %v2849_v58, %v2843_v41  ;;  %2870 = vtanh.f32 %v667_v29  ;;  %v672_v41 = vadd.f32 %v3574_v11, %v564_v53  ;;  %v733_v43 = vadd.f32 %v3668_v14, %v625_v21  ;;  %v3775_v21 = vld [vmem:[%s4812_s3] sm:$0xff] }
  0xae   : > { %v3718_v5 = vpop.eup %2852  ;;  %v2708_v6 = vpack.c.bf16 %v2851_v63, %v2845_v46  ;;  %2872 = vtanh.f32 %v689_v31  ;;  %v711_v31 = vadd.f32 %v3670_v15, %v603_v57  ;;  %v691_v49 = vadd.f32 %v3610_v35, %v583_v10 }
  0xaf   : > { %v2855_v52 = vpop.eup %2854  ;;  %2707 = vmatprep.subr.bf16.mxu0 %v2706_v3  ;;  %2794 = vmatprep.subr.bf16.mxu1 %v2706_v3  ;;  %2874 = vtanh.f32 %v710_v56  ;;  %v3740_v50 = vadd.f32 %v3574_v11, %v563_v16  ;;  %v3743_v53 = vadd.f32 %v3610_v35, %v585_v28  ;;  %v628_v57 = vmul.f32 %v3554_v1, %v3643_v51 }
  0xb0   : > { %v2857_v29 = vpop.eup %2856  ;;  %2709 = vmatpush1.bf16.msra.mxu0 %v2708_v6  ;;  %2796 = vmatpush1.bf16.msra.mxu1 %v2708_v6  ;;  %2876 = vtanh.f32 %v732_v59  ;;  %v606_v59 = vmul.f32 %v3554_v1, %v3645_v54  ;;  %v608_v62 = vmul.f32 %v3565_v7, %v3645_v54  ;;  %v630_v2 = vmul.f32 %v3565_v7, %v3643_v51 }
  0xb1   : > { %v3732_v42 = vpop.eup %2858  ;;  %2878 = vtanh.f32 %v712_v60  ;;  %v2722_v3 = vpack.c.bf16 %v2857_v29, %v3718_v5  ;;  %v605_v10 = vmul.f32 %v3568_v8, %v3645_v54  ;;  %v627_v7 = vmul.f32 %v3568_v8, %v3643_v51 }
  0xb2   : > { %v2861_v46 = vpop.eup %2860  ;;  %2880 = vtanh.f32 %v734_v61  ;;  %v2714_v61 = vpack.c.bf16 %v2855_v52, %v3704_v55  ;;  %v3754_v4 = vadd.f32 %v3670_v15, %v606_v59  ;;  %v3759_v55 = vadd.f32 %v3668_v14, %v628_v57 }
  0xb3   : > { %v2863_v56 = vpop.eup %2862  ;;  %2882 = vtanh.f32 %v709_v20  ;;  %v3765_v5 = vadd.f32 %v3670_v15, %v608_v62  ;;  %v3768_v52 = vadd.f32 %v3668_v14, %v630_v2  ;;  %v3783_v28 = vadd.f32 %v3670_v15, %v605_v10  ;;  %v3821_v2 = vld [vmem:[%s4812_s3 + $0x18] sm:$0xff] }
  0xb4   : > { %v2865_v58 = vpop.eup %2864  ;;  %v2710_v60 = vpack.c.bf16 %v2863_v56, %v2861_v46  ;;  %2884 = vtanh.f32 %v731_v30  ;;  %v607_v8 = vmul.f32 %v3571_v9, %v3645_v54  ;;  %v629_v29 = vmul.f32 %v3571_v9, %v3643_v51 }
  0xb5   : > { %v2867_v63 = vpop.eup %2866  ;;  %2886 = vtanh.f32 %v711_v31  ;;  %v3790_v31 = vadd.f32 %v3668_v14, %v627_v7  ;;  %v568_v9 = vmul.f32 %v3593_v23, %v3576_v12  ;;  %v567_v62 = vmul.f32 %v3599_v26, %v3576_v12 }
  0xb6   : > { %v2869_v6 = vpop.eup %2868  ;;  %2711 = vmatprep.subr.bf16.mxu0 %v2710_v60  ;;  %2795 = vmatprep.subr.bf16.mxu1 %v2710_v60  ;;  %v2712_v1 = vpack.c.bf16 %v2867_v63, %v2865_v58  ;;  %2888 = vtanh.f32 %v733_v43  ;;  %v566_v43 = vmul.f32 %v3579_v13, %v3576_v12  ;;  %v590_v58 = vmul.f32 %v3593_v23, %v3612_v36 }
  0xb7   : > { %v2871_v16 = vpop.eup %2870  ;;  %2890 = vtanh.f32 %v3690_v37  ;;  %v3780_v37 = vld [vmem:[%s4812_s3 + $0x10] sm:$0xff]  ;;  %v2716_v56 = vpack.c.bf16 %v2869_v6, %v3732_v42  ;;  %v565_v42 = vmul.f32 %v3596_v25, %v3576_v12  ;;  %v589_v6 = vmul.f32 %v3599_v26, %v3612_v36 }
  0xb8   : > { %v2873_v20 = vpop.eup %2872  ;;  %2713 = vmatpush1.bf16.msra.mxu0 %v2712_v1  ;;  %2797 = vmatpush1.bf16.msra.mxu1 %v2712_v1  ;;  %2892 = vtanh.f32 %v692_v0  ;;  %v588_v0 = vmul.f32 %v3579_v13, %v3612_v36  ;;  %v674_v10 = vadd.f32 %v3574_v11, %v566_v43  ;;  %v3832_v7 = vadd.f32 %v3574_v11, %v568_v9 }
  0xb9   : > { %v2875_v30 = vpop.eup %2874  ;;  %2715 = vmatprep.subr.bf16.mxu1 %v2714_v61  ;;  %2723 = vmatprep.subr.bf16.mxu0 %v2722_v3  ;;  %2894 = vtanh.f32 %v672_v41  ;;  %v2724_v59 = vpack.c.bf16 %v2873_v20, %v2871_v16  ;;  %v715_v61 = vadd.f32 %v3670_v15, %v607_v8  ;;  %v3838_v8 = vadd.f32 %v3610_v35, %v590_v58 }
  0xba   : > { %v2877_v46 = vpop.eup %2876  ;;  %2896 = vtanh.f32 %v694_v45  ;;  %v3810_v45 = vld [vmem:[%s4812_s3 + $0x8] sm:$0xff]  ;;  %v696_v16 = vadd.f32 %v3610_v35, %v588_v0  ;;  %v3851_v43 = vadd.f32 %v3574_v11, %v567_v62 }
  0xbb   : > { %v2879_v57 = vpop.eup %2878  ;;  %2656 = vmatmul.mubr.msk.f32.vlgmr.msra.gmra.mrb[0].mxu0 %vm859_vm0, %v3775_v21  ;;  %2658 = vmatmul.mubr.msk.f32.vlgmr.msra.gmra.mrb[0].mxu1 %vm859_vm0, %v3780_v37  ;;  %v2718_v41 = vpack.c.bf16 %v2877_v46, %v2875_v30  ;;  %2898 = vtanh.f32 %v669_v48  ;;  %v587_v48 = vmul.f32 %v3596_v25, %v3612_v36 }
  0xbc   : > { %v2881_v60 = vpop.eup %2880  ;;  %2717 = vmatpush1.bf16.msra.mxu1 %v2716_v56  ;;  %2725 = vmatpush1.bf16.msra.mxu0 %v2724_v59  ;;  %2900 = vtanh.f32 %v691_v49  ;;  %v737_v49 = vadd.f32 %v3668_v14, %v629_v29  ;;  %v3858_v56 = vadd.f32 %v3610_v35, %v589_v6  ;;  %v570_v6 = vmul.f32 %v3608_v34, %v3576_v12 }
  0xbd   : > { %v2883_v63 = vpop.eup %2882  ;;  %2719 = vmatprep.subr.bf16.mxu1 %v2718_v41  ;;  %v2726_v3 = vpack.c.bf16 %v2881_v60, %v2879_v57  ;;  %942 = vmatprep.mubr.f32.mxu0 %v3355_v19  ;;  %2902 = vtanh.f32 %v3740_v50  ;;  %v3848_v30 = vadd.f32 %v3610_v35, %v587_v48  ;;  %v612_v57 = vmul.f32 %v3593_v23, %v3645_v54 }
  0xbe   : > { %v2885_v1 = vpop.eup %2884  ;;  %954 = vmatprep.mubr.f32.mxu1 %v3355_v19  ;;  %2904 = vtanh.f32 %v3743_v53  ;;  %v3841_v53 = vadd.f32 %v3574_v11, %v565_v42  ;;  %v634_v41 = vmul.f32 %v3593_v23, %v3643_v51 }
  0xbf   : > { %v2887_v20 = vpop.eup %2886  ;;  %2727 = vmatprep.subr.bf16.mxu0 %v2726_v3  ;;  %2657 = vmatmul.mubr.msk.f32.gmra.mrb[2].mxu0 %vm859_vm0, %v3810_v45  ;;  %v2720_v50 = vpack.c.bf16 %v2885_v1, %v2883_v63  ;;  %2906 = vtanh.f32 %v3754_v4  ;;  %v610_v4 = vmul.f32 %v3579_v13, %v3645_v54  ;;  %v3880_v60 = vadd.f32 %v3670_v15, %v612_v57 }
  0xc0   : > { %v2889_v29 = vpop.eup %2888  ;;  %2659 = vmatmul.mubr.msk.f32.gmra.mrb[2].mxu1 %vm859_vm0, %v3821_v2  ;;  %1114 = vmatprep.mubr.f32.mxu0 %v3355_v19  ;;  %2908 = vtanh.f32 %v3759_v55  ;;  %v632_v55 = vmul.f32 %v3579_v13, %v3643_v51  ;;  %v609_v13 = vmul.f32 %v3596_v25, %v3645_v54  ;;  %v3883_v23 = vadd.f32 %v3668_v14, %v634_v41 }
  0xc1   : > { %v2891_v0 = vpop.eup %2890  ;;  %2721 = vmatpush1.bf16.msra.mxu1 %v2720_v50  ;;  %v2728_v46 = vpack.c.bf16 %v2889_v29, %v2887_v20  ;;  %1025 = vmatprep.mubr.f32.mxu1 %v3355_v19  ;;  %2910 = vtanh.f32 %v3765_v5  ;;  %v3864_v9 = vadd.f32 %v3670_v15, %v610_v4  ;;  %v592_v50 = vmul.f32 %v3608_v34, %v3612_v36 }
  0xc2   : > { %v2893_v59 = vpop.eup %2892  ;;  %2912 = vtanh.f32 %v3768_v52  ;;  %v3872_v42 = vadd.f32 %v3668_v14, %v632_v55  ;;  %v3889_v63 = vadd.f32 %v3670_v15, %v609_v13  ;;  %v569_v4 = vmul.f32 %v3619_v39, %v3576_v12 }
  0xc3   : > { %v2895_v58 = vpop.eup %2894  ;;  %2729 = vmatpush1.bf16.msra.mxu0 %v2728_v46  ;;  %v2730_v5 = vpack.c.bf16 %v2893_v59, %v2891_v0  ;;  %2914 = vtanh.f32 %v3783_v28  ;;  %v631_v28 = vmul.f32 %v3596_v25, %v3643_v51  ;;  %v633_v25 = vmul.f32 %v3599_v26, %v3643_v51 }
  0xc4   : > { %v2897_v52 = vpop.eup %2896  ;;  %2660 = vmatmul.mubr.msk.f32.vlgmr.msra.gmra.mrb[4].mxu1 %vm859_vm0, %v3775_v21  ;;  %2916 = vtanh.f32 %v3790_v31  ;;  %v611_v31 = vmul.f32 %v3599_v26, %v3645_v54  ;;  %v594_v26 = vmul.f32 %v3616_v38, %v3612_v36  ;;  %v3936_v13 = vadd.f32 %v3574_v11, %v570_v6 }
  0xc5   : > { %v2899_v48 = vpop.eup %2898  ;;  %2731 = vmatprep.subr.bf16.mxu1 %v2730_v5  ;;  %v2738_v62 = vpack.c.bf16 %v2897_v52, %v2895_v58  ;;  %1031 = vmatprep.mubr.f32.mxu1 %v3355_v19  ;;  %2918 = vtanh.f32 %v715_v61  ;;  %v571_v61 = vmul.f32 %v3622_v40, %v3576_v12  ;;  %v3918_v55 = vadd.f32 %v3668_v14, %v631_v28 }
  0xc6   : > { %v2901_v3 = vpop.eup %2900  ;;  %2664 = vmatmul.mubr.msk.f32.vlgmr.msra.gmra.mrb[4].mxu0 %vm859_vm0, %v3775_v21  ;;  %2920 = vtanh.f32 %v737_v49  ;;  %v572_v49 = vmul.f32 %v3616_v38, %v3576_v12  ;;  %v3926_v57 = vadd.f32 %v3670_v15, %v611_v31  ;;  %v3929_v41 = vadd.f32 %v3668_v14, %v633_v25 }
  0xc7   : > { %v2903_v1 = vpop.eup %2902  ;;  %2739 = vmatprep.subr.bf16.mxu0 %v2738_v62  ;;  %v2732_v20 = vpack.c.bf16 %v2901_v3, %v2899_v48  ;;  %1120 = vmatprep.mubr.f32.mxu0 %v3355_v19  ;;  %2922 = vtanh.f32 %v674_v10  ;;  %v3913_v0 = vadd.f32 %v3574_v11, %v571_v61  ;;  %v3948_v48 = vadd.f32 %v3610_v35, %v594_v26 }
  0xc8   : > { %v2905_v29 = vpop.eup %2904  ;;  %2661 = vmatmul.mubr.msk.f32.gmra.mrb[6].mxu1 %vm859_vm0, %v3810_v45  ;;  %2924 = vtanh.f32 %v696_v16  ;;  %v591_v16 = vmul.f32 %v3619_v39, %v3612_v36  ;;  %v3945_v28 = vadd.f32 %v3574_v11, %v572_v49  ;;  %v3970_v61 = vmul.f32 %v3608_v34, %v3643_v51 }
  0xc9   : > { %v2907_v10 = vpop.eup %2906  ;;  %2733 = vmatpush1.bf16.msra.mxu1 %v2732_v20  ;;  %v2740_v46 = vpack.c.bf16 %v2905_v29, %v2903_v1  ;;  %2926 = vtanh.f32 %v3832_v7  ;;  %1037 = vmatprep.mubr.f32.mxu1 %v3355_v19  ;;  %v593_v7 = vmul.f32 %v3622_v40, %v3612_v36  ;;  %v598_v29 = vmul.f32 %v3638_v47, %v3612_v36 }
  0xca   : > { %v2909_v59 = vpop.eup %2908  ;;  %2665 = vmatmul.mubr.msk.f32.gmra.mrb[6].mxu0 %vm859_vm0, %v3810_v45  ;;  %2928 = vtanh.f32 %v3838_v8  ;;  %v3939_v8 = vadd.f32 %v3610_v35, %v592_v50  ;;  %v3956_v3 = vadd.f32 %v3610_v35, %v591_v16  ;;  %v576_v50 = vmul.f32 %v3638_v47, %v3576_v12 }
  0xcb   : > { %v2911_v58 = vpop.eup %2910  ;;  %2741 = vmatpush1.bf16.msra.mxu0 %v2740_v46  ;;  %v2734_v5 = vpack.c.bf16 %v2909_v59, %v2907_v10  ;;  %1126 = vmatprep.mubr.f32.mxu0 %v3355_v19  ;;  %2930 = vtanh.f32 %v3841_v53  ;;  %v3951_v53 = vadd.f32 %v3574_v11, %v569_v4  ;;  %v3966_v6 = vadd.f32 %v3610_v35, %v593_v7 }
  0xcc   : > { %v2913_v52 = vpop.eup %2912  ;;  %2662 = vmatmul.mubr.msk.f32.gmra.mrb[8].mxu1 %vm859_vm0, %v3780_v37  ;;  %2932 = vtanh.f32 %v3848_v30  ;;  %v3960_v30 = vmul.f32 %v3608_v34, %v3645_v54  ;;  %v4002_v16 = vadd.f32 %v3610_v35, %v598_v29  ;;  %v595_v59 = vmul.f32 %v3675_v17, %v3612_v36 }
  0xcd   : > { %v2915_v62 = vpop.eup %2914  ;;  %2735 = vmatprep.subr.bf16.mxu1 %v2734_v5  ;;  %v2742_v31 = vpack.c.bf16 %v2913_v52, %v2911_v58  ;;  %1043 = vmatprep.mubr.f32.mxu1 %v3355_v19  ;;  %2934 = vtanh.f32 %v3851_v43  ;;  %v574_v43 = vmul.f32 %v3631_v44, %v3576_v12  ;;  %v575_v5 = vmul.f32 %v3678_v18, %v3576_v12 }
  0xce   : > { %v2917_v25 = vpop.eup %2916  ;;  %2666 = vmatmul.mubr.msk.f32.gmra.mrb[8].mxu0 %vm859_vm0, %v3780_v37  ;;  %2936 = vtanh.f32 %v3858_v56  ;;  %v596_v56 = vmul.f32 %v3631_v44, %v3612_v36 }
  0xcf   : > { %v2919_v1 = vpop.eup %2918  ;;  %2743 = vmatprep.subr.bf16.mxu0 %v2742_v31  ;;  %v2736_v20 = vpack.c.bf16 %v2917_v25, %v2915_v62  ;;  %1132 = vmatprep.mubr.f32.mxu0 %v3355_v19  ;;  %2938 = vtanh.f32 %v3864_v9  ;;  %v3984_v34 = vadd.f32 %v3574_v11, %v574_v43  ;;  %v573_v9 = vmul.f32 %v3675_v17, %v3576_v12 }
  0xd0   : > { %v2921_v49 = vpop.eup %2920  ;;  %2663 = vmatmul.mubr.msk.f32.gmra.mrb[10].mxu1 %vm859_vm0, %v3821_v2  ;;  %2940 = vtanh.f32 %v3872_v42  ;;  %v3993_v10 = vadd.f32 %v3610_v35, %v596_v56  ;;  %v3996_v42 = vadd.f32 %v3574_v11, %v576_v50  ;;  %v4019_v62 = vadd.f32 %v3610_v35, %v595_v59 }
  0xd1   : > { %v2923_v26 = vpop.eup %2922  ;;  %2737 = vmatpush1.bf16.msra.mxu1 %v2736_v20  ;;  %v2744_v4 = vpack.c.bf16 %v2921_v49, %v2919_v1  ;;  %1203 = vmatprep.mubr.f32.mxu1 %v3355_v19  ;;  %2942 = vtanh.f32 %v3880_v60  ;;  %v4007_v60 = vadd.f32 %v3574_v11, %v573_v9  ;;  %v618_v31 = vmul.f32 %v3631_v44, %v3645_v54 }
  0xd2   : > { %v2925_v46 = vpop.eup %2924  ;;  %2667 = vmatmul.mubr.msk.f32.gmra.mrb[10].mxu0 %vm859_vm0, %v3821_v2  ;;  %2944 = vtanh.f32 %v3883_v23  ;;  %v597_v23 = vmul.f32 %v3678_v18, %v3612_v36  ;;  %v4028_v36 = vadd.f32 %v3574_v11, %v575_v5  ;;  %v639_v49 = vmul.f32 %v3675_v17, %v3643_v51 }
  0xd3   : > { %v2927_v7 = vpop.eup %2926  ;;  %2745 = vmatpush1.bf16.msra.mxu0 %v2744_v4  ;;  %v2746_v58 = vpack.c.bf16 %v2925_v46, %v2923_v26  ;;  %1292 = vmatprep.mubr.f32.mxu0 %v3355_v19  ;;  %2946 = vtanh.f32 %v3889_v63  ;;  %v640_v63 = vmul.f32 %v3631_v44, %v3643_v51  ;;  %v4037_v44 = vadd.f32 %v3670_v15, %v618_v31 }
  0xd4   : > { %v2929_v52 = vpop.eup %2928  ;;  %2668 = vmatmul.mubr.msk.f32.vlgmr.msra.gmra.mrb[12].mxu1 %vm859_vm0, %v3775_v21  ;;  %2948 = vtanh.f32 %v3918_v55  ;;  %v4031_v55 = vadd.f32 %v3610_v35, %v597_v23  ;;  %v642_v35 = vmul.f32 %v3638_v47, %v3643_v51  ;;  %v638_v5 = vmul.f32 %v3616_v38, %v3643_v51 }
  0xd5   : > { %v2931_v25 = vpop.eup %2930  ;;  %2747 = vmatprep.subr.bf16.mxu1 %v2746_v58  ;;  %v2754_v12 = vpack.c.bf16 %v2929_v52, %v2927_v7  ;;  %1209 = vmatprep.mubr.f32.mxu1 %v3355_v19  ;;  %2950 = vtanh.f32 %v3926_v57  ;;  %v4040_v1 = vadd.f32 %v3668_v14, %v640_v63  ;;  %v620_v57 = vmul.f32 %v3638_v47, %v3645_v54 }
  0xd6   : > { %v2933_v43 = vpop.eup %2932  ;;  %2672 = vmatmul.mubr.msk.f32.vlgmr.msra.gmra.mrb[12].mxu0 %vm859_vm0, %v3775_v21  ;;  %2952 = vtanh.f32 %v3929_v41  ;;  %v617_v41 = vmul.f32 %v3675_v17, %v3645_v54  ;;  %v4063_v9 = vadd.f32 %v3668_v14, %v642_v35  ;;  %v4072_v17 = vadd.f32 %v3668_v14, %v639_v49 }
  0xd7   : > { %v2935_v11 = vpop.eup %2934  ;;  %2755 = vmatprep.subr.bf16.mxu0 %v2754_v12  ;;  %v2748_v20 = vpack.c.bf16 %v2933_v43, %v2931_v25  ;;  %1298 = vmatprep.mubr.f32.mxu0 %v3355_v19  ;;  %2954 = vtanh.f32 %v3936_v13  ;;  %v4054_v50 = vadd.f32 %v3670_v15, %v620_v57  ;;  %v619_v13 = vmul.f32 %v3678_v18, %v3645_v54 }
  0xd8   : > { %v2937_v56 = vpop.eup %2936  ;;  %2669 = vmatmul.mubr.msk.f32.gmra.mrb[14].mxu1 %vm859_vm0, %v3810_v45  ;;  %2956 = vtanh.f32 %v3939_v8  ;;  %v4066_v8 = vadd.f32 %v3670_v15, %v617_v41  ;;  %v722_v7 = vadd.f32 %v3670_v15, %v3960_v30  ;;  %v615_v12 = vmul.f32 %v3622_v40, %v3645_v54 }
  0xd9   : > { %v2939_v29 = vpop.eup %2938  ;;  %2749 = vmatpush1.bf16.msra.mxu1 %v2748_v20  ;;  %v2756_v47 = vpack.c.bf16 %v2937_v56, %v2935_v11  ;;  %2958 = vtanh.f32 %v3945_v28  ;;  %1215 = vmatprep.mubr.f32.mxu1 %v3355_v19  ;;  %v641_v28 = vmul.f32 %v3678_v18, %v3643_v51  ;;  %v4077_v4 = vadd.f32 %v3670_v15, %v619_v13 }
  0xda   : > { %v2941_v26 = vpop.eup %2940  ;;  %2673 = vmatmul.mubr.msk.f32.gmra.mrb[14].mxu0 %vm859_vm0, %v3810_v45  ;;  %2960 = vtanh.f32 %v3948_v48  ;;  %v616_v48 = vmul.f32 %v3616_v38, %v3645_v54  ;;  %v744_v18 = vadd.f32 %v3668_v14, %v3970_v61  ;;  %v746_v38 = vadd.f32 %v3668_v14, %v638_v5 }
  0xdb   : > { %v2943_v46 = vpop.eup %2942  ;;  %2757 = vmatpush1.bf16.msra.mxu0 %v2756_v47  ;;  %v2750_v59 = vpack.c.bf16 %v2941_v26, %v2939_v29  ;;  %1304 = vmatprep.mubr.f32.mxu0 %v3355_v19  ;;  %2962 = vtanh.f32 %v3951_v53  ;;  %v4093_v53 = vadd.f32 %v3668_v14, %v641_v28  ;;  %v635_v61 = vmul.f32 %v3619_v39, %v3643_v51 }
  0xdc   : > { %v2945_v58 = vpop.eup %2944  ;;  %2670 = vmatmul.mubr.msk.f32.gmra.mrb[16].mxu1 %vm859_vm0, %v3780_v37  ;;  %2964 = vtanh.f32 %v3956_v3  ;;  %v724_v52 = vadd.f32 %v3670_v15, %v616_v48  ;;  %v613_v3 = vmul.f32 %v3619_v39, %v3645_v54  ;;  %v637_v39 = vmul.f32 %v3622_v40, %v3643_v51 }
  0xdd   : > { %v2947_v23 = vpop.eup %2946  ;;  %2751 = vmatprep.subr.bf16.mxu1 %v2750_v59  ;;  %v2758_v30 = vpack.c.bf16 %v2945_v58, %v2943_v46  ;;  %1221 = vmatprep.mubr.f32.mxu1 %v3355_v19  ;;  %2966 = vtanh.f32 %v3913_v0  ;;  %v723_v20 = vadd.f32 %v3670_v15, %v615_v12 }
  0xde   : > { %v2949_v31 = vpop.eup %2948  ;;  %2674 = vmatmul.mubr.msk.f32.gmra.mrb[16].mxu0 %vm859_vm0, %v3780_v37  ;;  %2968 = vtanh.f32 %v3966_v6  ;;  %v721_v0 = vadd.f32 %v3670_v15, %v613_v3  ;;  %v743_v6 = vadd.f32 %v3668_v14, %v635_v61  ;;  %v745_v54 = vadd.f32 %v3668_v14, %v637_v39 }
  0xdf   : > { %v2951_v63 = vpop.eup %2950  ;;  %2759 = vmatprep.subr.bf16.mxu0 %v2758_v30  ;;  %v2752_v25 = vpack.c.bf16 %v2949_v31, %v2947_v23  ;;  %1310 = vmatprep.mubr.f32.mxu0 %v3355_v19  ;;  %2970 = vtanh.f32 %v722_v7 }
  0xe0   : > { %v2953_v43 = vpop.eup %2952  ;;  %2671 = vmatmul.mubr.msk.f32.gmra.mrb[18].mxu1 %vm859_vm0, %v3821_v2  ;;  %2972 = vtanh.f32 %v744_v18 }
  0xe1   : > { %v2955_v57 = vpop.eup %2954  ;;  %2753 = vmatpush1.bf16.msra.mxu1 %v2752_v25  ;;  %v2760_v11 = vpack.c.bf16 %v2953_v43, %v2951_v63  ;;  %1381 = vmatprep.mubr.f32.mxu1 %v3355_v19  ;;  %2974 = vtanh.f32 %v724_v52 }
  0xe2   : > { %v2957_v35 = vpop.eup %2956  ;;  %2675 = vmatmul.mubr.msk.f32.gmra.mrb[18].mxu0 %vm859_vm0, %v3821_v2  ;;  %2976 = vtanh.f32 %v746_v38 }
  0xe3   : > { %v2959_v41 = vpop.eup %2958  ;;  %2761 = vmatpush1.bf16.msra.mxu0 %v2760_v11  ;;  %v2762_v56 = vpack.c.bf16 %v2957_v35, %v2955_v57  ;;  %1470 = vmatprep.mubr.f32.mxu0 %v3355_v19  ;;  %2978 = vtanh.f32 %v721_v0 }
  0xe4   : > { %v2961_v40 = vpop.eup %2960  ;;  %2676 = vmatmul.mubr.msk.f32.vlgmr.msra.gmra.mrb[20].mxu1 %vm859_vm0, %v3775_v21  ;;  %2980 = vtanh.f32 %v743_v6 }
  0xe5   : > { %v2963_v51 = vpop.eup %2962  ;;  %2763 = vmatprep.subr.bf16.mxu1 %v2762_v56  ;;  %v2770_v15 = vpack.c.bf16 %v2961_v40, %v2959_v41  ;;  %1387 = vmatprep.mubr.f32.mxu1 %v3355_v19  ;;  %2982 = vtanh.f32 %v723_v20 }
  0xe6   : > { %v2965_v49 = vpop.eup %2964  ;;  %2680 = vmatmul.mubr.msk.f32.vlgmr.msra.gmra.mrb[20].mxu0 %vm859_vm0, %v3775_v21  ;;  %2984 = vtanh.f32 %v745_v54 }
  0xe7   : > { %v2967_v14 = vpop.eup %2966  ;;  %2771 = vmatprep.subr.bf16.mxu0 %v2770_v15  ;;  %v2764_v13 = vpack.c.bf16 %v2965_v49, %v2963_v51  ;;  %1476 = vmatprep.mubr.f32.mxu0 %v3355_v19  ;;  %2986 = vtanh.f32 %v3984_v34 }
  0xe8   : > { %v2969_v29 = vpop.eup %2968  ;;  %2677 = vmatmul.mubr.msk.f32.gmra.mrb[22].mxu1 %vm859_vm0, %v3810_v45  ;;  %2988 = vtanh.f32 %v3993_v10 }
  0xe9   : > { %v2971_v47 = vpop.eup %2970  ;;  %2765 = vmatpush1.bf16.msra.mxu1 %v2764_v13  ;;  %v2772_v26 = vpack.c.bf16 %v2969_v29, %v2967_v14  ;;  %2990 = vtanh.f32 %v3996_v42  ;;  %1393 = vmatprep.mubr.f32.mxu1 %v3355_v19 }
  0xea   : > { %v2973_v28 = vpop.eup %2972  ;;  %2681 = vmatmul.mubr.msk.f32.gmra.mrb[22].mxu0 %vm859_vm0, %v3810_v45  ;;  %2992 = vtanh.f32 %v4002_v16 }
  0xeb   : > { %v2975_v34 = vpop.eup %2974  ;;  %2773 = vmatpush1.bf16.msra.mxu0 %v2772_v26  ;;  %v2766_v46 = vpack.c.bf16 %v2973_v28, %v2971_v47  ;;  %1482 = vmatprep.mubr.f32.mxu0 %v3355_v19  ;;  %2994 = vtanh.f32 %v4007_v60 }
  0xec   : > { %v2977_v10 = vpop.eup %2976  ;;  %2678 = vmatmul.mubr.msk.f32.gmra.mrb[24].mxu1 %vm859_vm0, %v3780_v37  ;;  %2996 = vtanh.f32 %v4019_v62 }
  0xed   : > { %v2979_v42 = vpop.eup %2978  ;;  %2767 = vmatprep.subr.bf16.mxu1 %v2766_v46  ;;  %v2774_v59 = vpack.c.bf16 %v2977_v10, %v2975_v34  ;;  %1399 = vmatprep.mubr.f32.mxu1 %v3355_v19  ;;  %2998 = vtanh.f32 %v4028_v36 }
  0xee   : > { %v2981_v16 = vpop.eup %2980  ;;  %2682 = vmatmul.mubr.msk.f32.gmra.mrb[24].mxu0 %vm859_vm0, %v3780_v37  ;;  %3000 = vtanh.f32 %v4031_v55 }
  0xef   : > { %v2983_v60 = vpop.eup %2982  ;;  %2775 = vmatprep.subr.bf16.mxu0 %v2774_v59  ;;  %v2768_v7 = vpack.c.bf16 %v2981_v16, %v2979_v42  ;;  %1488 = vmatprep.mubr.f32.mxu0 %v3355_v19  ;;  %3002 = vtanh.f32 %v4037_v44 }
  0xf0   : > { %v2985_v62 = vpop.eup %2984  ;;  %2679 = vmatmul.mubr.msk.f32.gmra.mrb[26].mxu1 %vm859_vm0, %v3821_v2  ;;  %3004 = vtanh.f32 %v4040_v1 }
  0xf1   : > { %v2987_v36 = vpop.eup %2986  ;;  %2769 = vmatpush1.bf16.msra.mxu1 %v2768_v7  ;;  %v2776_v48 = vpack.c.bf16 %v2985_v62, %v2983_v60  ;;  %1559 = vmatprep.mubr.f32.mxu1 %v3355_v19  ;;  %3006 = vtanh.f32 %v4054_v50 }
  0xf2   : > { %v2989_v55 = vpop.eup %2988  ;;  %2683 = vmatmul.mubr.msk.f32.gmra.mrb[26].mxu0 %vm859_vm0, %v3821_v2  ;;  %3008 = vtanh.f32 %v4063_v9 }
  0xf3   : > { %v2991_v44 = vpop.eup %2990  ;;  %2777 = vmatpush1.bf16.msra.mxu0 %v2776_v48  ;;  %v2778_v58 = vpack.c.bf16 %v2989_v55, %v2987_v36  ;;  %1648 = vmatprep.mubr.f32.mxu0 %v3355_v19  ;;  %3010 = vtanh.f32 %v4066_v8 }
  0xf4   : > { %v2993_v1 = vpop.eup %2992  ;;  %2684 = vmatmul.mubr.msk.f32.vlgmr.msra.gmra.mrb[28].mxu1 %vm859_vm0, %v3775_v21  ;;  %3012 = vtanh.f32 %v4072_v17 }
  0xf5   : > { %v2995_v50 = vpop.eup %2994  ;;  %2779 = vmatprep.subr.bf16.mxu1 %v2778_v58  ;;  %v2786_v18 = vpack.c.bf16 %v2993_v1, %v2991_v44  ;;  %1565 = vmatprep.mubr.f32.mxu1 %v3355_v19  ;;  %3014 = vtanh.f32 %v4077_v4 }
  0xf6   : > { %v2997_v9 = vpop.eup %2996  ;;  %2688 = vmatmul.mubr.msk.f32.vlgmr.msra.gmra.mrb[28].mxu0 %vm859_vm0, %v3775_v21  ;;  %3016 = vtanh.f32 %v4093_v53 }
  0xf7   : > { %v2999_v8 = vpop.eup %2998  ;;  %2787 = vmatprep.subr.bf16.mxu0 %v2786_v18  ;;  %v2780_v5 = vpack.c.bf16 %v2997_v9, %v2995_v50  ;;  %1654 = vmatprep.mubr.f32.mxu0 %v3355_v19 }
  0xf8   : > { %v3001_v23 = vpop.eup %3000  ;;  %2685 = vmatmul.mubr.msk.f32.gmra.mrb[30].mxu1 %vm859_vm0, %v3810_v45 }
  0xf9   : > { %v3003_v17 = vpop.eup %3002  ;;  %2781 = vmatpush1.bf16.msra.mxu1 %v2780_v5  ;;  %v2788_v30 = vpack.c.bf16 %v3001_v23, %v2999_v8  ;;  %1571 = vmatprep.mubr.f32.mxu1 %v3355_v19 }
  0xfa   : > { %v3005_v4 = vpop.eup %3004  ;;  %2689 = vmatmul.mubr.msk.f32.gmra.mrb[30].mxu0 %vm859_vm0, %v3810_v45 }
  0xfb   : > { %v3007_v52 = vpop.eup %3006  ;;  %2789 = vmatpush1.bf16.msra.mxu0 %v2788_v30  ;;  %v2782_v53 = vpack.c.bf16 %v3005_v4, %v3003_v17  ;;  %1660 = vmatprep.mubr.f32.mxu0 %v3355_v19 }
  0xfc   : > { %v3009_v3 = vpop.eup %3008  ;;  %2686 = vmatmul.mubr.msk.f32.gmra.mrb[32].mxu1 %vm859_vm0, %v3780_v37 }
  0xfd   : > { %v3011_v31 = vpop.eup %3010  ;;  %2783 = vmatprep.subr.bf16.mxu1 %v2782_v53  ;;  %v2790_v38 = vpack.c.bf16 %v3009_v3, %v3007_v52  ;;  %1577 = vmatprep.mubr.f32.mxu1 %v3355_v19 }
  0xfe   : > { %v3013_v61 = vpop.eup %3012  ;;  %2690 = vmatmul.mubr.msk.f32.gmra.mrb[32].mxu0 %vm859_vm0, %v3780_v37 }
  0xff   : > { %v3015_v63 = vpop.eup %3014  ;;  %2791 = vmatprep.subr.bf16.mxu0 %v2790_v38  ;;  %v2784_v25 = vpack.c.bf16 %v3013_v61, %v3011_v31  ;;  %1666 = vmatprep.mubr.f32.mxu0 %v3355_v19 }
 0x100   : > { %v3017_v0 = vpop.eup %3016  ;;  %2687 = vmatmul.mubr.msk.f32.gmra.mrb[34].mxu1 %vm859_vm0, %v3821_v2 }
 0x101   : > { %2785 = vmatpush1.bf16.msra.mxu1 %v2784_v25  ;;  %v2792_v12 = vpack.c.bf16 %v3017_v0, %v3015_v63  ;;  %1737 = vmatprep.mubr.f32.mxu1 %v3355_v19 }
 0x102   : > { %2691 = vmatmul.mubr.msk.f32.gmra.mrb[34].mxu0 %vm859_vm0, %v3821_v2 }
 0x103   : > { %2793 = vmatpush1.bf16.msra.mxu0 %v2792_v12  ;;  %1826 = vmatprep.mubr.f32.mxu0 %v3355_v19 }
 0x104   : > { %2692 = vmatmul.mubr.msk.f32.vlgmr.msra.gmra.mrb[36].mxu1 %vm859_vm0, %v3775_v21 }
 0x105   : > { %1743 = vmatprep.mubr.f32.mxu1 %v3355_v19 }
 0x106   : > { %2696 = vmatmul.mubr.msk.f32.vlgmr.msra.gmra.mrb[36].mxu0 %vm859_vm0, %v3775_v21  ;;  %v4207_v21 = vpop.permute.xlu0 %841 }
 0x107   : > { %1832 = vmatprep.mubr.f32.mxu0 %v3355_v19 }
 0x108   : > { %2693 = vmatmul.mubr.msk.f32.gmra.mrb[38].mxu1 %vm859_vm0, %v3810_v45 }
 0x109   : > { %1749 = vmatprep.mubr.f32.mxu1 %v3355_v19 }
 0x10a   : > { %2697 = vmatmul.mubr.msk.f32.gmra.mrb[38].mxu0 %vm859_vm0, %v3810_v45  ;;  %v4209_v45 = vpop.permute.xlu1 %846  ;;  %v4211_v43 = vpop.permute.xlu0 %851 }
 0x10b   : > { %1838 = vmatprep.mubr.f32.mxu0 %v3355_v19 }
 0x10c   : > { %2694 = vmatmul.mubr.msk.f32.gmra.mrb[40].mxu1 %vm859_vm0, %v3780_v37 }
 0x10d   : > { %1755 = vmatprep.mubr.f32.mxu1 %v3355_v19 }
 0x10e   : > { %2698 = vmatmul.mubr.msk.f32.gmra.mrb[40].mxu0 %vm859_vm0, %v3780_v37  ;;  %v4223_v13 = vpop.permute.xlu0 %1941 }
 0x10f   : > { %1844 = vmatprep.mubr.f32.mxu0 %v3355_v19 }
 0x110   : > { %2695 = vmatmul.mubr.msk.f32.gmra.mrb[42].mxu1 %vm859_vm0, %v3821_v2 }
 0x112   : > { %2699 = vmatmul.mubr.msk.f32.gmra.mrb[42].mxu0 %vm859_vm0, %v3821_v2  ;;  %v4217_v2 = vpop.permute.xlu1 %856  ;;  %v4231_v62 = vpop.permute.xlu0 %1951 }
 0x116   : > { %v4228_v59 = vpop.permute.xlu1 %1946  ;;  %v2248_v25 = vpop.permute.xlu0 %2247 }
 0x11a   : > { %v4240_v3 = vpop.permute.xlu1 %1956 }
 0x18e   : > { %v938_v6 = vpop.f32.mrb[0].mxu0  ;;  %v950_v39 = vpop.f32.mrb[0].mxu1 }
 0x18f   : > { %v939_v57 = vadd.f32 %v938_v6, %v4207_v21  ;;  %v951_v37 = vadd.f32 %v950_v39, %v4211_v43  ;;  %v940_v11 = vpop.f32.mrb[1].mxu0  ;;  %v952_v19 = vpop.f32.mrb[1].mxu1 }
 0x190   : > { %v941_v20 = vadd.f32 %v940_v11, %v4207_v21  ;;  %v953_v35 = vadd.f32 %v952_v19, %v4211_v43 }
 0x191   : > { %3018 = vtanh.f32 %v939_v57 }
 0x192   : > { %3020 = vtanh.f32 %v951_v37  ;;  %v944_v54 = vpop.f32.mrb[2].mxu0 }
 0x193   : > { %3022 = vtanh.f32 %v941_v20  ;;  %v945_v41 = vadd.f32 %v944_v54, %v4209_v45  ;;  %v956_v56 = vpop.f32.mrb[2].mxu1  ;;  %v946_v40 = vpop.f32.mrb[3].mxu0 }
 0x194   : > { %3024 = vtanh.f32 %v953_v35  ;;  %v957_v51 = vadd.f32 %v956_v56, %v4217_v2  ;;  %v947_v15 = vadd.f32 %v946_v40, %v4209_v45  ;;  %v958_v49 = vpop.f32.mrb[3].mxu1 }
 0x195   : > { %3026 = vtanh.f32 %v945_v41  ;;  %v959_v14 = vadd.f32 %v958_v49, %v4217_v2 }
 0x196   : > { %3028 = vtanh.f32 %v957_v51 }
 0x197   : > { %3030 = vtanh.f32 %v947_v15  ;;  %v1027_v29 = vpop.f32.mrb[4].mxu1  ;;  %v4252_v15 = vrot.slane %v2248_v25, %v3513_v32 }
 0x198   : > { %v1028_v47 = vadd.f32 %v1027_v29, %v4207_v21  ;;  %v1029_v26 = vpop.f32.mrb[5].mxu1  ;;  %3032 = vtanh.f32 %v959_v14 }
 0x199   : > { %v1116_v28 = vpop.f32.mrb[4].mxu0  ;;  %v1030_v34 = vadd.f32 %v1029_v26, %v4207_v21 }
 0x19a   : > { %3034 = vtanh.f32 %v1028_v47  ;;  %v1117_v46 = vadd.f32 %v1116_v28, %v4207_v21  ;;  %v1118_v10 = vpop.f32.mrb[5].mxu0 }
 0x19b   : > { %v3019_v42 = vpop.eup %3018  ;;  %3036 = vtanh.f32 %v1030_v34  ;;  %v1119_v16 = vadd.f32 %v1118_v10, %v4207_v21  ;;  %v1033_v60 = vpop.f32.mrb[6].mxu1 }
 0x19c   : > { %v3021_v7 = vpop.eup %3020  ;;  %3038 = vtanh.f32 %v1117_v46  ;;  %v1034_v36 = vadd.f32 %v1033_v60, %v4209_v45  ;;  %v1035_v48 = vpop.f32.mrb[7].mxu1  ;;  %v1959_v17 = vmul.f32 %v3019_v42, %v4223_v13 }
 0x19d   : > { %v3023_v55 = vpop.eup %3022  ;;  %3040 = vtanh.f32 %v1119_v16  ;;  %v1122_v44 = vpop.f32.mrb[6].mxu0  ;;  %v1036_v58 = vadd.f32 %v1035_v48, %v4209_v45  ;;  %v2003_v31 = vmul.f32 %v3021_v7, %v4231_v62 }
 0x19e   : > { %v3025_v1 = vpop.eup %3024  ;;  %3042 = vtanh.f32 %v1034_v36  ;;  %v1123_v50 = vadd.f32 %v1122_v44, %v4209_v45  ;;  %v1124_v18 = vpop.f32.mrb[7].mxu0  ;;  %v1960_v38 = vmul.f32 %v3023_v55, %v4223_v13 }
 0x19f   : > { %v3027_v9 = vpop.eup %3026  ;;  %3044 = vtanh.f32 %v1036_v58  ;;  %v1125_v8 = vadd.f32 %v1124_v18, %v4209_v45  ;;  %v1039_v5 = vpop.f32.mrb[8].mxu1  ;;  %v2004_v37 = vmul.f32 %v3025_v1, %v4231_v62 }
 0x1a0   : > { %v3029_v23 = vpop.eup %3028  ;;  %v1981_v30 = vmul.f32 %v3027_v9, %v4228_v59  ;;  %3046 = vtanh.f32 %v1123_v50  ;;  %v1040_v4 = vadd.f32 %v1039_v5, %v4211_v43  ;;  %v1041_v52 = vpop.f32.mrb[9].mxu1 }
 0x1a1   : > { %v3031_v53 = vpop.eup %3030  ;;  %3048 = vtanh.f32 %v1125_v8  ;;  %v1128_v61 = vpop.f32.mrb[8].mxu0  ;;  %v1042_v63 = vadd.f32 %v1041_v52, %v4211_v43  ;;  %v2025_v11 = vmul.f32 %v3029_v23, %v4240_v3 }
 0x1a2   : > { %v2047_v0 = vadd.f32 %v1981_v30, %v1959_v17  ;;  %v1982_v12 = vmul.f32 %v3031_v53, %v4228_v59  ;;  %3050 = vtanh.f32 %v1040_v4  ;;  %v1129_v6 = vadd.f32 %v1128_v61, %v4211_v43  ;;  %v1130_v39 = vpop.f32.mrb[9].mxu0  ;;  %v3033_v57 = vpop.eup %3032 }
 0x1a3   : > { %3052 = vtanh.f32 %v1042_v63  ;;  %v1131_v19 = vadd.f32 %v1130_v39, %v4211_v43  ;;  %v1045_v20 = vpop.f32.mrb[10].mxu1  ;;  %v2026_v26 = vmul.f32 %v3033_v57, %v4240_v3 }
 0x1a4   : > { %v3035_v35 = vpop.eup %3034  ;;  %v2048_v54 = vadd.f32 %v2047_v0, %v2003_v31  ;;  %v2056_v41 = vadd.f32 %v1982_v12, %v1960_v38  ;;  %3054 = vtanh.f32 %v1129_v6  ;;  %v1046_v56 = vadd.f32 %v1045_v20, %v4217_v2  ;;  %v1047_v40 = vpop.f32.mrb[11].mxu1 }
 0x1a5   : > { %v3037_v51 = vpop.eup %3036  ;;  %3056 = vtanh.f32 %v1131_v19  ;;  %v1134_v49 = vpop.f32.mrb[10].mxu0  ;;  %v1048_v14 = vadd.f32 %v1047_v40, %v4217_v2  ;;  %v1961_v10 = vmul.f32 %v3035_v35, %v4223_v13 }
 0x1a6   : > { %v3039_v29 = vpop.eup %3038  ;;  %v2049_v47 = vadd.f32 %v2048_v54, %v2025_v11  ;;  %v2057_v28 = vadd.f32 %v2056_v41, %v2004_v37  ;;  %3058 = vtanh.f32 %v1046_v56  ;;  %v1136_v34 = vpop.f32.mrb[11].mxu0  ;;  %v1135_v42 = vadd.f32 %v1134_v49, %v4217_v2 }
 0x1a7   : > { %v3041_v46 = vpop.eup %3040  ;;  %3060 = vtanh.f32 %v1048_v14  ;;  %v1137_v16 = vadd.f32 %v1136_v34, %v4217_v2  ;;  %v1205_v60 = vpop.f32.mrb[12].mxu1  ;;  %v1962_v55 = vmul.f32 %v3037_v51, %v4223_v13  ;;  %v1963_v50 = vmul.f32 %v3039_v29, %v4223_v13 }
 0x1a8   : > { %v3043_v7 = vpop.eup %3042  ;;  %v2050_v36 = vrot.slane %v2049_v47, 4  ;;  %v2058_v48 = vadd.f32 %v2057_v28, %v2026_v26  ;;  %v1206_v44 = vadd.f32 %v1205_v60, %v4207_v21  ;;  %v1207_v58 = vpop.f32.mrb[13].mxu1  ;;  %v1964_v18 = vmul.f32 %v3041_v46, %v4223_v13 }
 0x1a9   : > { %v3045_v1 = vpop.eup %3044  ;;  %v1983_v9 = vmul.f32 %v3043_v7, %v4228_v59  ;;  %3062 = vtanh.f32 %v1135_v42  ;;  %v1294_v8 = vpop.f32.mrb[12].mxu0  ;;  %v1208_v19 = vadd.f32 %v1207_v58, %v4207_v21 }
 0x1aa   : > { %v3047_v5 = vpop.eup %3046  ;;  %v2051_v23 = vadd.f32 %v2050_v36, %v2049_v47  ;;  %v2059_v17 = vrot.slane %v2058_v48, 4  ;;  %v1984_v30 = vmul.f32 %v3045_v1, %v4228_v59  ;;  %3064 = vtanh.f32 %v1137_v16  ;;  %v1296_v4 = vpop.f32.mrb[13].mxu0 }
 0x1ab   : > { %v3049_v52 = vpop.eup %3048  ;;  %v2065_v53 = vadd.f32 %v1983_v9, %v1961_v10  ;;  %v1985_v31 = vmul.f32 %v3047_v5, %v4228_v59  ;;  %3066 = vtanh.f32 %v1206_v44  ;;  %v1295_v38 = vadd.f32 %v1294_v8, %v4207_v21  ;;  %v1211_v61 = vpop.f32.mrb[14].mxu1 }
 0x1ac   : > { %v3051_v63 = vpop.eup %3050  ;;  %v2052_v25 = vrot.slane %v2051_v23, 2  ;;  %v2060_v0 = vadd.f32 %v2059_v17, %v2058_v48  ;;  %v2074_v12 = vadd.f32 %v1984_v30, %v1962_v55  ;;  %v1986_v6 = vmul.f32 %v3049_v52, %v4228_v59  ;;  %v1213_v39 = vpop.f32.mrb[15].mxu1 }
 0x1ad   : > { %v3053_v57 = vpop.eup %3052  ;;  %v2083_v37 = vadd.f32 %v1985_v31, %v1963_v50  ;;  %v2005_v11 = vmul.f32 %v3051_v63, %v4231_v62  ;;  %3068 = vtanh.f32 %v1295_v38  ;;  %v1300_v20 = vpop.f32.mrb[14].mxu0  ;;  %v1297_v47 = vadd.f32 %v1296_v4, %v4207_v21 }
 0x1ae   : > { %v3055_v35 = vpop.eup %3054  ;;  %v2053_v54 = vadd.f32 %v2052_v25, %v2051_v23  ;;  %v2061_v41 = vrot.slane %v2060_v0, 2  ;;  %v2092_v56 = vadd.f32 %v1986_v6, %v1964_v18  ;;  %v2006_v40 = vmul.f32 %v3053_v57, %v4231_v62  ;;  %v1302_v51 = vpop.f32.mrb[15].mxu0 }
 0x1af   : > { %v3057_v49 = vpop.eup %3056  ;;  %v2066_v14 = vadd.f32 %v2065_v53, %v2005_v11  ;;  %v2007_v29 = vmul.f32 %v3055_v35, %v4231_v62  ;;  %v1212_v26 = vadd.f32 %v1211_v61, %v4209_v45  ;;  %v1217_v28 = vpop.f32.mrb[16].mxu1  ;;  %3070 = vtanh.f32 %v1208_v19 }
 0x1b0   : > { %v3059_v34 = vpop.eup %3058  ;;  %v2054_v46 = vrot.slane %v2053_v54, 1  ;;  %v2062_v10 = vadd.f32 %v2061_v41, %v2060_v0  ;;  %v2075_v42 = vadd.f32 %v2074_v12, %v2006_v40  ;;  %v2008_v16 = vmul.f32 %v3057_v49, %v4231_v62  ;;  %v4275_v60 = vpop.f32.mrb[17].mxu1 }
 0x1b1   : > { %v3061_v7 = vpop.eup %3060  ;;  %v2084_v36 = vadd.f32 %v2083_v37, %v2007_v29  ;;  %v2027_v48 = vmul.f32 %v3059_v34, %v4240_v3  ;;  %v1301_v55 = vadd.f32 %v1300_v20, %v4209_v45  ;;  %v1306_v44 = vpop.f32.mrb[16].mxu0  ;;  %3072 = vtanh.f32 %v1212_v26 }
 0x1b2   : > { %v2055_v58 = vadd.f32 %v2054_v46, %v2053_v54  ;;  %v2063_v1 = vrot.slane %v2062_v10, 1  ;;  %v2093_v50 = vadd.f32 %v2092_v56, %v2008_v16  ;;  %v2028_v18 = vmul.f32 %v3061_v7, %v4240_v3  ;;  %v4280_v9 = vpop.f32.mrb[17].mxu0 }
 0x1b3   : > { %v3063_v8 = vpop.eup %3062  ;;  %v2067_v5 = vadd.f32 %v2066_v14, %v2027_v48  ;;  %v4282_v23 = vpop.f32.mrb[18].mxu1  ;;  %3074 = vtanh.f32 %v1301_v55  ;;  %v1214_v35 = vadd.f32 %v1213_v39, %v4209_v45  ;;  %v1303_v49 = vadd.f32 %v1302_v51, %v4209_v45 }
 0x1b4   : > { %v3065_v17 = vpop.eup %3064  ;;  %v4285_v30 = vadd.f32 %v4252_v15, %v2055_v58  ;;  %v2064_v4 = vadd.f32 %v2063_v1, %v2062_v10  ;;  %v2029_v52 = vmul.f32 %v3063_v8, %v4240_v3  ;;  %v2076_v53 = vadd.f32 %v2075_v42, %v2028_v18  ;;  %v4288_v31 = vpop.f32.mrb[19].mxu1 }
 0x1b5   : > { %v3067_v38 = vpop.eup %3066  ;;  %v2068_v61 = vrot.slane %v2067_v5, 4  ;;  %v2030_v63 = vmul.f32 %v3065_v17, %v4240_v3  ;;  %v4291_v25 = vpop.f32.mrb[18].mxu0  ;;  %3076 = vtanh.f32 %v1297_v47  ;;  %v1218_v34 = vadd.f32 %v1217_v28, %v4211_v43 }
 0x1b6   : > { %v2298_v0 = vmin.f32 %v4285_v30, 20.0  ;;  %v4295_v12 = vadd.f32 %v4252_v15, %v2064_v4  ;;  %v2085_v6 = vadd.f32 %v2084_v36, %v2029_v52  ;;  %v4297_v57 = vpop.f32.mrb[19].mxu0  ;;  %v2077_v19 = vrot.slane %v2076_v53, 4 }
 0x1b7   : > { %v3069_v37 = vpop.eup %3068  ;;  %v2069_v11 = vadd.f32 %v2068_v61, %v2067_v5  ;;  %v2094_v20 = vadd.f32 %v2093_v50, %v2030_v63  ;;  %v4300_v54 = vpop.f32.mrb[20].mxu1  ;;  %v1965_v42 = vmul.f32 %v3067_v38, %v4223_v13  ;;  %v1307_v1 = vadd.f32 %v1306_v44, %v4211_v43 }
 0x1b8   : > { %v2320_v41 = vmul.f32 1.442695, %v2298_v0  ;;  %v2299_v56 = vmin.f32 %v4295_v12, 20.0  ;;  %v2086_v40 = vrot.slane %v2085_v6, 4  ;;  %v4304_v14 = vpop.f32.mrb[21].mxu1  ;;  %v2078_v47 = vadd.f32 %v2077_v19, %v2076_v53 }
 0x1b9   : > { %v2070_v29 = vrot.slane %v2069_v11, 2  ;;  %v2095_v26 = vrot.slane %v2094_v20, 4  ;;  %v4307_v46 = vpop.f32.mrb[20].mxu0  ;;  %v3071_v7 = vpop.eup %3070  ;;  %v1967_v28 = vmul.f32 %v3069_v37, %v4223_v13  ;;  %v1220_v38 = vadd.f32 %v4275_v60, %v4211_v43 }
 0x1ba   : > { %3078 = vpow2.f32 %v2320_v41  ;;  %v2322_v10 = vmul.f32 1.442695, %v2299_v56  ;;  %v2087_v39 = vadd.f32 %v2086_v40, %v2085_v6  ;;  %v4310_v16 = vpop.f32.mrb[21].mxu0  ;;  %v2079_v48 = vrot.slane %v2078_v47, 2 }
 0x1bb   : > { %v2071_v36 = vadd.f32 %v2070_v29, %v2069_v11  ;;  %v2096_v51 = vadd.f32 %v2095_v26, %v2094_v20  ;;  %3080 = vtanh.f32 %v1214_v35  ;;  %v4312_v55 = vpop.f32.mrb[22].mxu1  ;;  %v3073_v18 = vpop.eup %3072  ;;  %vm2276_vm1 = vcmp.gt.f32.partialorder %v4285_v30, 20.0 }
 0x1bc   : > { %3082 = vpow2.f32 %v2322_v10  ;;  %v2088_v58 = vrot.slane %v2087_v39, 2  ;;  %v4316_v50 = vpop.f32.mrb[23].mxu1  ;;  %v2080_v5 = vadd.f32 %v2079_v48, %v2078_v47  ;;  %v1987_v53 = vmul.f32 %v3073_v18, %v4228_v59 }
 0x1bd   : > { %v2072_v8 = vrot.slane %v2071_v36, 1  ;;  %v2097_v17 = vrot.slane %v2096_v51, 2  ;;  %3084 = vtanh.f32 %v1303_v49  ;;  %v4318_v4 = vpop.f32.mrb[22].mxu0  ;;  %v3075_v63 = vpop.eup %3074  ;;  %v1309_v49 = vadd.f32 %v4280_v9, %v4211_v43 }
 0x1be   : > { %v2089_v52 = vadd.f32 %v2088_v58, %v2087_v39  ;;  %3086 = vtanh.f32 %v1218_v34  ;;  %v4323_v61 = vpop.f32.mrb[23].mxu0  ;;  %v2081_v0 = vrot.slane %v2080_v5, 1  ;;  %v2101_v20 = vadd.f32 %v1987_v53, %v1965_v42 }
 0x1bf   : > { %v2073_v44 = vadd.f32 %v2072_v8, %v2071_v36  ;;  %v2098_v6 = vadd.f32 %v2097_v17, %v2096_v51  ;;  %3088 = vtanh.f32 %v1307_v1  ;;  %v4325_v37 = vpop.f32.mrb[24].mxu1  ;;  %v3077_v11 = vpop.eup %3076  ;;  %v1989_v35 = vmul.f32 %v3075_v63, %v4228_v59 }
 0x1c0   : > { %v2090_v19 = vrot.slane %v2089_v52, 1  ;;  %3090 = vtanh.f32 %v1220_v38  ;;  %v4328_v41 = vpop.f32.mrb[25].mxu1  ;;  %v2082_v60 = vadd.f32 %v2081_v0, %v2080_v5  ;;  %v1966_v8 = vmul.f32 %v3071_v7, %v4223_v13 }
 0x1c1   : > { %v4331_v56 = vadd.f32 %v4252_v15, %v2073_v44  ;;  %v2099_v40 = vrot.slane %v2098_v6, 1  ;;  %v4335_v29 = vpop.f32.mrb[24].mxu0  ;;  %v2119_v26 = vadd.f32 %v1989_v35, %v1967_v28  ;;  %3092 = vtanh.f32 %v1309_v49 }
 0x1c2   : > { %v2091_v47 = vadd.f32 %v2090_v19, %v2089_v52  ;;  %v4337_v34 = vpop.f32.mrb[25].mxu0  ;;  %v4341_v39 = vadd.f32 %v4252_v15, %v2082_v60  ;;  %v1968_v38 = vmul.f32 %v3077_v11, %v4223_v13  ;;  %v1224_v7 = vadd.f32 %v4282_v23, %v4217_v2 }
 0x1c3   : > { %v2300_v10 = vmin.f32 %v4331_v56, 20.0  ;;  %v2100_v42 = vadd.f32 %v2099_v40, %v2098_v6  ;;  %v4343_v36 = vpop.f32.mrb[26].mxu1  ;;  %v1313_v11 = vadd.f32 %v4291_v25, %v4217_v2  ;;  %vm2277_vm2 = vcmp.gt.f32.partialorder %v4295_v12, 20.0 }
 0x1c4   : > { %v3079_v48 = vpop.eup %3078  ;;  %v4346_v51 = vadd.f32 %v4252_v15, %v2091_v47  ;;  %v4348_v9 = vpop.f32.mrb[27].mxu1  ;;  %v2301_v18 = vmin.f32 %v4341_v39, 20.0  ;;  %vm2278_vm3 = vcmp.gt.f32.partialorder %v4331_v56, 20.0  ;;  %vm2279_vm5 = vcmp.gt.f32.partialorder %v4341_v39, 20.0 }
 0x1c5   : > { %v3081_v58 = vpop.eup %3080  ;;  %v2364_v1 = vadd.f32 1.0, %v3079_v48  ;;  %v2324_v28 = vmul.f32 1.442695, %v2300_v10  ;;  %v4352_v5 = vpop.f32.mrb[26].mxu0  ;;  %v4356_v53 = vadd.f32 %v4252_v15, %v2100_v42  ;;  %v4472_v32 = vadd.f32 %v4348_v9, %v4217_v2 }
 0x1c6   : > { %v3083_v17 = vpop.eup %3082  ;;  %v2302_v52 = vmin.f32 %v4346_v51, 20.0  ;;  %v1988_v63 = vmul.f32 %v3081_v58, %v4228_v59  ;;  %v4360_v44 = vpop.f32.mrb[27].mxu0  ;;  %v2326_v19 = vmul.f32 1.442695, %v2301_v18  ;;  %vm2280_vm4 = vcmp.gt.f32.partialorder %v4346_v51, 20.0 }
 0x1c7   : > { %v3085_v0 = vpop.eup %3084  ;;  %3094 = vlog2.f32 %v2364_v1  ;;  %v2365_v6 = vadd.f32 1.0, %v3083_v17  ;;  %v4364_v35 = vpop.f32.mrb[28].mxu1  ;;  %v2303_v49 = vmin.f32 %v4356_v53, 20.0  ;;  %v1226_v17 = vadd.f32 %v4288_v31, %v4217_v2 }
 0x1c8   : > { %v3087_v60 = vpop.eup %3086  ;;  %3096 = vpow2.f32 %v2324_v28  ;;  %v2328_v40 = vmul.f32 1.442695, %v2302_v52  ;;  %v4369_v47 = vpop.f32.mrb[29].mxu1  ;;  %v2110_v42 = vadd.f32 %v1988_v63, %v1966_v8  ;;  %v1990_v48 = vmul.f32 %v3085_v0, %v4228_v59 }
 0x1c9   : > { %v3089_v10 = vpop.eup %3088  ;;  %3098 = vlog2.f32 %v2365_v6  ;;  %v2009_v58 = vmul.f32 %v3087_v60, %v4231_v62  ;;  %v4373_v23 = vpop.f32.mrb[28].mxu0  ;;  %v2330_v28 = vmul.f32 1.442695, %v2303_v49  ;;  %v1315_v60 = vadd.f32 %v4297_v57, %v4217_v2 }
 0x1ca   : > { %v3091_v1 = vpop.eup %3090  ;;  %3100 = vpow2.f32 %v2328_v40  ;;  %v2011_v18 = vmul.f32 %v3089_v10, %v4231_v62  ;;  %v4378_v25 = vpop.f32.mrb[29].mxu0  ;;  %v2128_v52 = vadd.f32 %v1990_v48, %v1968_v38  ;;  %v1384_v31 = vadd.f32 %v4300_v54, %v4207_v21 }
 0x1cb   : > { %3102 = vpow2.f32 %v2326_v19  ;;  %v4380_v6 = vadd.f32 %v2101_v20, %v2009_v58  ;;  %v2010_v8 = vmul.f32 %v3091_v1, %v4231_v62  ;;  %v4383_v63 = vpop.f32.mrb[30].mxu1  ;;  %v3093_v38 = vpop.eup %3092  ;;  %v1473_v19 = vadd.f32 %v4307_v46, %v4207_v21 }
 0x1cc   : > { %3104 = vpow2.f32 %v2330_v28  ;;  %v4385_v0 = vadd.f32 %v2119_v26, %v2011_v18  ;;  %v4389_v40 = vpop.f32.mrb[31].mxu1  ;;  %v2012_v10 = vmul.f32 %v3093_v38, %v4231_v62  ;;  %v1386_v57 = vadd.f32 %v4304_v14, %v4207_v21 }
 0x1cd   : > { %v4391_v49 = vadd.f32 %v2110_v42, %v2010_v8  ;;  %3106 = vtanh.f32 %v1224_v7  ;;  %v4395_v20 = vpop.f32.mrb[30].mxu0  ;;  %v1475_v54 = vadd.f32 %v4310_v16, %v4207_v21  ;;  %v1390_v1 = vadd.f32 %v4312_v55, %v4209_v45 }
 0x1ce   : > { %3108 = vtanh.f32 %v1313_v11  ;;  %v4399_v26 = vpop.f32.mrb[31].mxu0  ;;  %v4410_v48 = vadd.f32 %v2128_v52, %v2012_v10  ;;  %v1479_v52 = vadd.f32 %v4318_v4, %v4209_v45  ;;  %v1392_v8 = vadd.f32 %v4316_v50, %v4209_v45 }
 0x1cf   : > { %3110 = vtanh.f32 %v1226_v17  ;;  %v4404_v42 = vpop.f32.mrb[32].mxu1  ;;  %v1396_v4 = vadd.f32 %v4325_v37, %v4211_v43  ;;  %v1487_v37 = vadd.f32 %v4337_v34, %v4211_v43  ;;  %vm2281_vm6 = vcmp.gt.f32.partialorder %v4356_v53, 20.0 }
 0x1d0   : > { %3112 = vtanh.f32 %v1315_v60  ;;  %v4408_v7 = vpop.f32.mrb[33].mxu1 }
 0x1d1   : > { %v3095_v11 = vpop.eup %3094  ;;  %3114 = vtanh.f32 %v1384_v31  ;;  %v4412_v46 = vpop.f32.mrb[32].mxu0 }
 0x1d2   : > { %v3097_v58 = vpop.eup %3096  ;;  %3116 = vtanh.f32 %v1473_v19  ;;  %v4416_v14 = vpop.f32.mrb[33].mxu0  ;;  %v2387_v31 = vmul.f32 0.6931472, %v3095_v11  ;;  %v1481_v19 = vadd.f32 %v4323_v61, %v4209_v45  ;;  %v1485_v11 = vadd.f32 %v4335_v29, %v4211_v43 }
 0x1d3   : > { %v3099_v28 = vpop.eup %3098  ;;  %v2366_v18 = vadd.f32 1.0, %v3097_v58  ;;  %3118 = vtanh.f32 %v1386_v57  ;;  %v4419_v16 = vpop.f32.mrb[34].mxu1  ;;  %v1398_v61 = vadd.f32 %v4328_v41, %v4211_v43 }
 0x1d4   : > { %v3101_v17 = vpop.eup %3100  ;;  %3120 = vtanh.f32 %v1475_v54  ;;  %v4426_v55 = vpop.f32.mrb[35].mxu1  ;;  %v2389_v58 = vmul.f32 0.6931472, %v3099_v28  ;;  %v1402_v28 = vadd.f32 %v4343_v36, %v4217_v2  ;;  %v2430_v29 = vsel %vm2276_vm1, %v4285_v30, %v2387_v31 }
 0x1d5   : > { %v3103_v60 = vpop.eup %3102  ;;  %3122 = vlog2.f32 %v2366_v18  ;;  %v2368_v38 = vadd.f32 1.0, %v3101_v17  ;;  %v4430_v10 = vpop.f32.mrb[34].mxu0 }
 0x1d6   : > { %v3105_v57 = vpop.eup %3104  ;;  %v2367_v54 = vadd.f32 1.0, %v3103_v60  ;;  %3124 = vtanh.f32 %v1390_v1  ;;  %v4434_v24 = vpop.f32.mrb[35].mxu0  ;;  %v2431_v36 = vsel %vm2277_vm2, %v4295_v12, %v2389_v58  ;;  %v2452_v58 = vmul.f32 0.06667134, %v2430_v29 }
 0x1d7   : > { %v3107_v50 = vpop.eup %3106  ;;  %3126 = vlog2.f32 %v2368_v38  ;;  %v2369_v33 = vadd.f32 1.0, %v3105_v57  ;;  %v4440_v18 = vpop.f32.mrb[36].mxu1  ;;  %v4456_v57 = vadd.f32 %v4352_v5, %v4217_v2 }
 0x1d8   : > { %4830 = vst [vmem:[#allocation10_spill] sm:$0xff] %v4440_v18  ;;  %v3109_v17 = vpop.eup %3108  ;;  %3128 = vlog2.f32 %v2367_v54  ;;  %v2031_v1 = vmul.f32 %v3107_v50, %v4240_v3  ;;  %v4447_v60 = vpop.f32.mrb[37].mxu1 }
 0x1d9   : > { %4831 = vst [vmem:[#allocation11_spill] sm:$0xff] %v4447_v60  ;;  %v3111_v38 = vpop.eup %3110  ;;  %3130 = vlog2.f32 %v2369_v33  ;;  %v2033_v41 = vmul.f32 %v3109_v17, %v4240_v3  ;;  %v4458_v34 = vpop.f32.mrb[36].mxu0 }
 0x1da   : > { %4832 = vst [vmem:[#allocation12_spill] sm:$0xff] %v4458_v34  ;;  %v3113_v54 = vpop.eup %3112  ;;  %v2103_v50 = vadd.f32 %v4380_v6, %v2031_v1  ;;  %v2032_v30 = vmul.f32 %v3111_v38, %v4240_v3  ;;  %3132 = vtanh.f32 %v1479_v52  ;;  %v4465_v31 = vpop.f32.mrb[37].mxu0 }
 0x1db   : > { %4833 = vst [vmem:[#allocation13_spill] sm:$0xff] %v4465_v31  ;;  %v3115_v33 = vpop.eup %3114  ;;  %v2121_v5 = vadd.f32 %v4385_v0, %v2033_v41  ;;  %v2034_v17 = vmul.f32 %v3113_v54, %v4240_v3  ;;  %3134 = vtanh.f32 %v1392_v8  ;;  %v4474_v12 = vpop.f32.mrb[38].mxu1  ;;  %v4482_v41 = vmul.f32 0.06667134, %v2431_v36 }
 0x1dc   : > { %4834 = vst [vmem:[#allocation14_spill] sm:$0xff] %v4474_v12  ;;  %v3117_v6 = vpop.eup %3116  ;;  %v2104_v52 = vrot.slane %v2103_v50, 4  ;;  %v2112_v1 = vadd.f32 %v4391_v49, %v2032_v30  ;;  %3136 = vtanh.f32 %v1481_v19  ;;  %v4478_v38 = vpop.f32.mrb[39].mxu1  ;;  %v1969_v49 = vmul.f32 %v3115_v33, %v4223_v13 }
 0x1dd   : > { %4835 = vst [vmem:[#allocation15_spill] sm:$0xff] %v4478_v38  ;;  %v4480_v0 = vpop.eup %3118  ;;  %v2122_v9 = vrot.slane %v2121_v5, 4  ;;  %v2130_v8 = vadd.f32 %v4410_v48, %v2034_v17  ;;  %3138 = vtanh.f32 %v1396_v4  ;;  %v4486_v54 = vpop.f32.mrb[38].mxu0  ;;  %v4494_v12 = vmul.f32 %v3117_v6, %v4223_v13 }
 0x1de   : > { %4836 = vst [vmem:[#allocation16_spill] sm:$0xff] %v4486_v54  ;;  %v4488_v29 = vpop.eup %3120  ;;  %v2105_v22 = vadd.f32 %v2104_v52, %v2103_v50  ;;  %v2113_v27 = vrot.slane %v2112_v1, 4  ;;  %3140 = vtanh.f32 %v1485_v11  ;;  %v4491_v19 = vpop.f32.mrb[39].mxu0 }
 0x1df   : > { %4837 = vst [vmem:[#allocation17_spill] sm:$0xff] %v4491_v19  ;;  %v3123_v30 = vpop.eup %3122  ;;  %v2123_v36 = vadd.f32 %v2122_v9, %v2121_v5  ;;  %v2131_v38 = vrot.slane %v2130_v8, 4  ;;  %3142 = vtanh.f32 %v1398_v61  ;;  %v4496_v48 = vpop.f32.mrb[40].mxu1 }
 0x1e0   : > { %4838 = vst [vmem:[#allocation18_spill] sm:$0xff] %v4496_v48  ;;  %v3125_v4 = vpop.eup %3124  ;;  %v2391_v17 = vmul.f32 0.6931472, %v3123_v30  ;;  %v2106_v54 = vrot.slane %v2105_v22, 2  ;;  %v2114_v31 = vadd.f32 %v2113_v27, %v2112_v1  ;;  %3144 = vtanh.f32 %v1487_v37  ;;  %v4498_v50 = vpop.f32.mrb[41].mxu1 }
 0x1e1   : > { %4839 = vst [vmem:[#allocation19_spill] sm:$0xff] %v4498_v50  ;;  %v3127_v33 = vpop.eup %3126  ;;  %v2124_v11 = vrot.slane %v2123_v36, 2  ;;  %v2132_v52 = vadd.f32 %v2131_v38, %v2130_v8  ;;  %v1991_v19 = vmul.f32 %v3125_v4, %v4228_v59  ;;  %3146 = vtanh.f32 %v1402_v28  ;;  %v4501_v5 = vpop.f32.mrb[40].mxu0 }
 0x1e2   : > { %4840 = vst [vmem:[#allocation20_spill] sm:$0xff] %v4501_v5  ;;  %v3129_v6 = vpop.eup %3128  ;;  %v2432_v61 = vsel %vm2278_vm3, %v4331_v56, %v2391_v17  ;;  %v2395_v9 = vmul.f32 0.6931472, %v3127_v33  ;;  %v2107_v30 = vadd.f32 %v2106_v54, %v2105_v22  ;;  %v2115_v48 = vrot.slane %v2114_v31, 2  ;;  %v4506_v27 = vpop.f32.mrb[41].mxu0 }
 0x1e3   : > { %4841 = vst [vmem:[#allocation21_spill] sm:$0xff] %v4506_v27  ;;  %v3131_v37 = vpop.eup %3130  ;;  %v2456_v1 = vmul.f32 0.14945135, %v2432_v61  ;;  %v2393_v50 = vmul.f32 0.6931472, %v3129_v6  ;;  %v2125_v60 = vadd.f32 %v2124_v11, %v2123_v36  ;;  %v2133_v38 = vrot.slane %v2132_v52, 2 }
 0x1e4   : > { %v4508_v8 = vpop.f32.mrb[42].mxu1  ;;  %v3133_v28 = vpop.eup %3132  ;;  %v2434_v4 = vsel %vm2280_vm4, %v4346_v51, %v2395_v9  ;;  %v2397_v5 = vmul.f32 0.6931472, %v3131_v37  ;;  %v2108_v34 = vrot.slane %v2107_v30, 1  ;;  %v2116_v56 = vadd.f32 %v2115_v48, %v2114_v31 }
 0x1e5   : > { %4842 = vst [vmem:[#allocation22_spill] sm:$0xff] %v4508_v8  ;;  %v4513_v17 = vpop.f32.mrb[43].mxu1  ;;  %v3135_v22 = vpop.eup %3134  ;;  %v2458_v54 = vadd.f32 %v2456_v1, %v2452_v58  ;;  %v2460_v33 = vmul.f32 0.21908636, %v2434_v4  ;;  %v2433_v36 = vsel %vm2279_vm5, %v4341_v39, %v2393_v50  ;;  %v2126_v11 = vrot.slane %v2125_v60, 1 }
 0x1e6   : > { %4843 = vst [vmem:[#allocation23_spill] sm:$0xff] %v4513_v17  ;;  %v4518_v6 = vpop.f32.mrb[42].mxu0  ;;  %v3137_v61 = vpop.eup %3136  ;;  %v2457_v8 = vmul.f32 0.14945135, %v2433_v36  ;;  %v2435_v51 = vsel %vm2281_vm6, %v4356_v53, %v2397_v5  ;;  %v2109_v9 = vadd.f32 %v2108_v34, %v2107_v30  ;;  %v2117_v31 = vrot.slane %v2116_v56, 1 }
 0x1e7   : > { %4844 = vst [vmem:[#allocation24_spill] sm:$0xff] %v4518_v6  ;;  %v4523_v48 = vpop.f32.mrb[43].mxu0  ;;  %v3139_v37 = vpop.eup %3138  ;;  %v4525_v58 = vadd.f32 %v2460_v33, %v2458_v54  ;;  %v2461_v1 = vmul.f32 0.21908636, %v2435_v51  ;;  %v2127_v4 = vadd.f32 %v2126_v11, %v2125_v60  ;;  %v2134_v17 = vadd.f32 %v2133_v38, %v2132_v52 }
 0x1e8   : > { %v3141_v39 = vpop.eup %3140  ;;  %v2459_v50 = vadd.f32 %v2457_v8, %v4482_v41  ;;  %v4529_v6 = vadd.f32 %v4252_v15, %v2109_v9  ;;  %v2118_v36 = vadd.f32 %v2117_v31, %v2116_v56  ;;  %v2137_v27 = vadd.f32 %v1991_v19, %v1969_v49 }
 0x1e9   : > { %v3143_v18 = vpop.eup %3142  ;;  %v4532_v53 = vadd.f32 %v4252_v15, %v2127_v4  ;;  %v2135_v34 = vrot.slane %v2134_v17, 1  ;;  %v1993_v5 = vmul.f32 %v3133_v28, %v4228_v59  ;;  %v1992_v30 = vmul.f32 %v3135_v22, %v4228_v59 }
 0x1ea   : > { %v3145_v54 = vpop.eup %3144  ;;  %v4536_v60 = vadd.f32 %v2461_v1, %v2459_v50  ;;  %v2304_v52 = vmin.f32 %v4529_v6, 20.0  ;;  %v4540_v41 = vadd.f32 %v4252_v15, %v2118_v36  ;;  %v1970_v49 = vmul.f32 %v4480_v0, %v4223_v13 }
 0x1eb   : > { %v3147_v19 = vpop.eup %3146  ;;  %v2306_v38 = vmin.f32 %v4532_v53, 20.0  ;;  %v2136_v8 = vadd.f32 %v2135_v34, %v2134_v17  ;;  %v2155_v56 = vadd.f32 %v1993_v5, %v4494_v12  ;;  %v1493_v28 = vadd.f32 %v4360_v44, %v4217_v2 }
 0x1ec   : > { %v2332_v22 = vmul.f32 1.442695, %v2304_v52  ;;  %v2305_v33 = vmin.f32 %v4540_v41, 20.0  ;;  %v1972_v11 = vmul.f32 %v4488_v29, %v4223_v13  ;;  %v2146_v51 = vadd.f32 %v1992_v30, %v1970_v49 }
 0x1ed   : > { %v2336_v9 = vmul.f32 1.442695, %v2306_v38  ;;  %v4552_v31 = vadd.f32 %v4252_v15, %v2136_v8  ;;  %v1994_v0 = vmul.f32 %v3137_v61, %v4228_v59  ;;  %v2013_v17 = vmul.f32 %v3139_v37, %v4231_v62 }
 0x1ee   : > { %3148 = vpow2.f32 %v2332_v22  ;;  %v2334_v12 = vmul.f32 1.442695, %v2305_v33  ;;  %v2015_v1 = vmul.f32 %v3141_v39, %v4231_v62  ;;  %v2014_v44 = vmul.f32 %v3143_v18, %v4231_v62 }
 0x1ef   : > { %3150 = vpow2.f32 %v2336_v9  ;;  %v2307_v4 = vmin.f32 %v4552_v31, 20.0  ;;  %v2164_v50 = vadd.f32 %v1994_v0, %v1972_v11  ;;  %v1562_v29 = vadd.f32 %v4364_v35, %v4207_v21 }
 0x1f0   : > { %3152 = vpow2.f32 %v2334_v12  ;;  %v2138_v36 = vadd.f32 %v2137_v27, %v2013_v17  ;;  %v2156_v34 = vadd.f32 %v2155_v56, %v2015_v1  ;;  %v2147_v5 = vadd.f32 %v2146_v51, %v2014_v44 }
 0x1f1   : > { %v2338_v61 = vmul.f32 1.442695, %v2307_v4  ;;  %v2016_v37 = vmul.f32 %v3145_v54, %v4231_v62  ;;  %v2035_v30 = vmul.f32 %v3147_v19, %v4240_v3  ;;  %3154 = vtanh.f32 %v4456_v57 }
 0x1f2   : > { %3156 = vtanh.f32 %v4472_v32  ;;  %v1651_v18 = vadd.f32 %v4373_v23, %v4207_v21  ;;  %v1564_v35 = vadd.f32 %v4369_v47, %v4207_v21  ;;  %v1653_v27 = vadd.f32 %v4378_v25, %v4207_v21 }
 0x1f3   : > { %3158 = vpow2.f32 %v2338_v61  ;;  %v2165_v39 = vadd.f32 %v2164_v50, %v2016_v37  ;;  %v2139_v52 = vadd.f32 %v2138_v36, %v2035_v30  ;;  %v1568_v57 = vadd.f32 %v4383_v63, %v4209_v45 }
 0x1f4   : > { %3160 = vtanh.f32 %v1493_v28  ;;  %v1657_v32 = vadd.f32 %v4395_v20, %v4209_v45  ;;  %v1570_v25 = vadd.f32 %v4389_v40, %v4209_v45  ;;  %v1659_v20 = vadd.f32 %v4399_v26, %v4209_v45 }
 0x1f5   : > { %v2140_v54 = vrot.slane %v2139_v52, 4  ;;  %3162 = vtanh.f32 %v1562_v29  ;;  %v1574_v51 = vadd.f32 %v4404_v42, %v4211_v43  ;;  %v1663_v9 = vadd.f32 %v4412_v46, %v4211_v43 }
 0x1f6   : > { %3164 = vtanh.f32 %v1651_v18  ;;  %v1576_v12 = vadd.f32 %v4408_v7, %v4211_v43  ;;  %v4589_v4 = vadd.f32 %v4416_v14, %v4211_v43  ;;  %vm2282_vm7 = vcmp.gt.f32.partialorder %v4529_v6, 20.0 }
 0x1f7   : > { %v2141_v23 = vadd.f32 %v2140_v54, %v2139_v52  ;;  %3166 = vtanh.f32 %v1564_v35  ;;  %vm2284_vm8 = vcmp.gt.f32.partialorder %v4532_v53, 20.0  ;;  %vm2283_vm9 = vcmp.gt.f32.partialorder %v4540_v41, 20.0 }
 0x1f8   : > { %v3149_v49 = vpop.eup %3148  ;;  %3168 = vtanh.f32 %v1653_v27  ;;  %vm2285_vm10 = vcmp.gt.f32.partialorder %v4552_v31, 20.0 }
 0x1f9   : > { %v3151_v19 = vpop.eup %3150  ;;  %v2370_v38 = vadd.f32 1.0, %v3149_v49  ;;  %v2142_v47 = vrot.slane %v2141_v23, 2  ;;  %3170 = vtanh.f32 %v1568_v57 }
 0x1fa   : > { %v3153_v8 = vpop.eup %3152  ;;  %v2372_v56 = vadd.f32 1.0, %v3151_v19  ;;  %3172 = vtanh.f32 %v1657_v32 }
 0x1fb   : > { %v3155_v28 = vpop.eup %3154  ;;  %3174 = vlog2.f32 %v2370_v38  ;;  %v2371_v63 = vadd.f32 1.0, %v3153_v8  ;;  %v2143_v22 = vadd.f32 %v2142_v47, %v2141_v23 }
 0x1fc   : > { %v3157_v33 = vpop.eup %3156  ;;  %3176 = vlog2.f32 %v2372_v56  ;;  %v2037_v11 = vmul.f32 %v3155_v28, %v4240_v3 }
 0x1fd   : > { %v3159_v0 = vpop.eup %3158  ;;  %3178 = vlog2.f32 %v2371_v63  ;;  %v2144_v40 = vrot.slane %v2143_v22, 1  ;;  %v2036_v17 = vmul.f32 %v3157_v33, %v4240_v3 }
 0x1fe   : > { %v3161_v1 = vpop.eup %3160  ;;  %v2373_v26 = vadd.f32 1.0, %v3159_v0  ;;  %v2157_v44 = vadd.f32 %v2156_v34, %v2037_v11  ;;  %3180 = vtanh.f32 %v1570_v25 }
 0x1ff   : > { %v3163_v42 = vpop.eup %3162  ;;  %v2145_v50 = vadd.f32 %v2144_v40, %v2143_v22  ;;  %v2148_v29 = vadd.f32 %v2147_v5, %v2036_v17  ;;  %v2038_v46 = vmul.f32 %v3161_v1, %v4240_v3  ;;  %3182 = vtanh.f32 %v1659_v20 }
 0x200   : > { %v3165_v36 = vpop.eup %3164  ;;  %3184 = vlog2.f32 %v2373_v26  ;;  %v2158_v7 = vrot.slane %v2157_v44, 4  ;;  %v1973_v18 = vmul.f32 %v3163_v42, %v4223_v13 }
 0x201   : > { %v3167_v61 = vpop.eup %3166  ;;  %v4596_v34 = vadd.f32 %v4252_v15, %v2145_v50  ;;  %v2149_v14 = vrot.slane %v2148_v29, 4  ;;  %v2166_v37 = vadd.f32 %v2165_v39, %v2038_v46  ;;  %v1975_v52 = vmul.f32 %v3165_v36, %v4223_v13 }
 0x202   : > { %v3169_v30 = vpop.eup %3168  ;;  %v2159_v5 = vadd.f32 %v2158_v7, %v2157_v44  ;;  %3186 = vtanh.f32 %v1574_v51  ;;  %v1974_v32 = vmul.f32 %v3167_v61, %v4223_v13 }
 0x203   : > { %v3171_v35 = vpop.eup %3170  ;;  %v2308_v27 = vmin.f32 %v4596_v34, 20.0  ;;  %v2150_v54 = vadd.f32 %v2149_v14, %v2148_v29  ;;  %v2167_v57 = vrot.slane %v2166_v37, 4  ;;  %v1976_v39 = vmul.f32 %v3169_v30, %v4223_v13 }
 0x204   : > { %v3173_v23 = vpop.eup %3172  ;;  %v2160_v49 = vrot.slane %v2159_v5, 2  ;;  %v1995_v19 = vmul.f32 %v3171_v35, %v4228_v59  ;;  %3188 = vtanh.f32 %v1663_v9  ;;  %vm2286_vm11 = vcmp.gt.f32.partialorder %v4596_v34, 20.0 }
 0x205   : > { %v3175_v38 = vpop.eup %3174  ;;  %v2340_v47 = vmul.f32 1.442695, %v2308_v27  ;;  %v2151_v8 = vrot.slane %v2150_v54, 2  ;;  %v2168_v56 = vadd.f32 %v2167_v57, %v2166_v37  ;;  %v1997_v25 = vmul.f32 %v3173_v23, %v4228_v59 }
 0x206   : > { %v3177_v28 = vpop.eup %3176  ;;  %v2399_v63 = vmul.f32 0.6931472, %v3175_v38  ;;  %v2161_v22 = vadd.f32 %v2160_v49, %v2159_v5  ;;  %v2173_v20 = vadd.f32 %v1995_v19, %v1973_v18  ;;  %3190 = vtanh.f32 %v1576_v12 }
 0x207   : > { %v3179_v33 = vpop.eup %3178  ;;  %v2403_v11 = vmul.f32 0.6931472, %v3177_v28  ;;  %3192 = vpow2.f32 %v2340_v47  ;;  %v2152_v51 = vadd.f32 %v2151_v8, %v2150_v54  ;;  %v2169_v0 = vrot.slane %v2168_v56, 2 }
 0x208   : > { %v3181_v40 = vpop.eup %3180  ;;  %v2436_v9 = vsel %vm2282_vm7, %v4529_v6, %v2399_v63  ;;  %v2401_v17 = vmul.f32 0.6931472, %v3179_v33  ;;  %v2162_v1 = vrot.slane %v2161_v22, 1  ;;  %v2191_v26 = vadd.f32 %v1997_v25, %v1975_v52 }
 0x209   : > { %v3183_v44 = vpop.eup %3182  ;;  %v2464_v42 = vmul.f32 0.26926672, %v2436_v9  ;;  %v2438_v50 = vsel %vm2284_vm8, %v4532_v53, %v2403_v11  ;;  %v2153_v12 = vrot.slane %v2152_v51, 1  ;;  %v2170_v29 = vadd.f32 %v2169_v0, %v2168_v56 }
 0x20a   : > { %v3185_v46 = vpop.eup %3184  ;;  %v2468_v36 = vmul.f32 0.29552424, %v2438_v50  ;;  %v2437_v7 = vsel %vm2283_vm9, %v4540_v41, %v2401_v17  ;;  %v2163_v61 = vadd.f32 %v2162_v1, %v2161_v22  ;;  %v1996_v6 = vmul.f32 %v3181_v40, %v4228_v59 }
 0x20b   : > { %v2466_v14 = vadd.f32 %v2464_v42, %v4525_v58  ;;  %v2465_v37 = vmul.f32 0.26926672, %v2437_v7  ;;  %v2405_v30 = vmul.f32 0.6931472, %v3185_v46  ;;  %v2154_v5 = vadd.f32 %v2153_v12, %v2152_v51  ;;  %v4848_v12 = vld [vmem:[#allocation13_spill] sm:$0xff] }
 0x20c   : > { %v3187_v18 = vpop.eup %3186  ;;  %v4618_v52 = vadd.f32 %v4252_v15, %v2163_v61  ;;  %v2171_v53 = vrot.slane %v2170_v29, 1  ;;  %v2182_v35 = vadd.f32 %v1996_v6, %v1974_v32  ;;  %v1998_v27 = vmul.f32 %v3183_v44, %v4228_v59 }
 0x20d   : > { %v4621_v54 = vadd.f32 %v2468_v36, %v2466_v14  ;;  %v2467_v41 = vadd.f32 %v2465_v37, %v4536_v60  ;;  %v2439_v57 = vsel %vm2285_vm10, %v4552_v31, %v2405_v30  ;;  %v4628_v58 = vadd.f32 %v4252_v15, %v2154_v5  ;;  %v4850_v14 = vld [vmem:[#allocation16_spill] sm:$0xff] }
 0x20e   : > { %v3189_v23 = vpop.eup %3188  ;;  %v2469_v49 = vmul.f32 0.29552424, %v2439_v57  ;;  %v2310_v19 = vmin.f32 %v4618_v52, 20.0  ;;  %v2172_v38 = vadd.f32 %v2171_v53, %v2170_v29  ;;  %v2200_v47 = vadd.f32 %v1998_v27, %v1976_v39  ;;  %v4849_v29 = vld [vmem:[#allocation14_spill] sm:$0xff] }
 0x20f   : > { %v2309_v32 = vmin.f32 %v4628_v58, 20.0  ;;  %v2017_v8 = vmul.f32 %v3187_v18, %v4231_v62  ;;  %v1580_v60 = vadd.f32 %v4419_v16, %v4217_v2  ;;  %v2019_v63 = vmul.f32 %v3189_v23, %v4231_v62 }
 0x210   : > { %v3191_v56 = vpop.eup %3190  ;;  %v4635_v25 = vadd.f32 %v2469_v49, %v2467_v41  ;;  %v2344_v31 = vmul.f32 1.442695, %v2310_v19  ;;  %v4638_v28 = vadd.f32 %v4252_v15, %v2172_v38  ;;  %3194 = vtanh.f32 %v4589_v4  ;;  %v4845_v4 = vld [vmem:[#allocation10_spill] sm:$0xff]  ;;  %v4852_v38 = vld [vmem:[#allocation17_spill] sm:$0xff] }
 0x211   : > { %v3193_v22 = vpop.eup %3192  ;;  %v2342_v33 = vmul.f32 1.442695, %v2309_v32  ;;  %v2174_v11 = vadd.f32 %v2173_v20, %v2017_v8  ;;  %v2018_v51 = vmul.f32 %v3191_v56, %v4231_v62  ;;  %v2192_v0 = vadd.f32 %v2191_v26, %v2019_v63  ;;  %v4846_v26 = vld [vmem:[#allocation12_spill] sm:$0xff] }
 0x212   : > { %v2374_v39 = vadd.f32 1.0, %v3193_v22  ;;  %3196 = vpow2.f32 %v2344_v31  ;;  %v2311_v16 = vmin.f32 %v4638_v28, 20.0  ;;  %v1669_v9 = vadd.f32 %v4430_v10, %v4217_v2  ;;  %v4847_v10 = vld [vmem:[#allocation11_spill] sm:$0xff]  ;;  %v4853_v22 = vld [vmem:[#allocation18_spill] sm:$0xff] }
 0x213   : > { %3198 = vpow2.f32 %v2342_v33  ;;  %v2183_v40 = vadd.f32 %v2182_v35, %v2018_v51  ;;  %v1582_v1 = vadd.f32 %v4426_v55, %v4217_v2  ;;  %v1671_v20 = vadd.f32 %v4434_v24, %v4217_v2 }
 0x214   : > { %3200 = vlog2.f32 %v2374_v39  ;;  %v2346_v17 = vmul.f32 1.442695, %v2311_v16  ;;  %v1740_v44 = vadd.f32 %v4845_v4, %v4207_v21  ;;  %v1829_v42 = vadd.f32 %v4846_v26, %v4207_v21 }
 0x215   : > { %3202 = vtanh.f32 %v1580_v60  ;;  %v1742_v50 = vadd.f32 %v4847_v10, %v4207_v21  ;;  %v1831_v55 = vadd.f32 %v4848_v12, %v4207_v21  ;;  %v1746_v24 = vadd.f32 %v4849_v29, %v4209_v45  ;;  %v4851_v21 = vld [vmem:[#allocation15_spill] sm:$0xff] }
 0x216   : > { %3204 = vpow2.f32 %v2346_v17  ;;  %v1835_v37 = vadd.f32 %v4850_v14, %v4209_v45  ;;  %v1748_v53 = vadd.f32 %v4851_v21, %v4209_v45  ;;  %v1837_v32 = vadd.f32 %v4852_v38, %v4209_v45 }
 0x217   : > { %3206 = vtanh.f32 %v1669_v9  ;;  %v1752_v33 = vadd.f32 %v4853_v22, %v4211_v43  ;;  %vm2288_vm12 = vcmp.gt.f32.partialorder %v4618_v52, 20.0  ;;  %vm2287_vm13 = vcmp.gt.f32.partialorder %v4628_v58, 20.0 }
 0x218   : > { %3208 = vtanh.f32 %v1582_v1  ;;  %vm2289_vm14 = vcmp.gt.f32.partialorder %v4638_v28, 20.0 }
 0x219   : > { %3210 = vtanh.f32 %v1671_v20  ;;  %v4855_v20 = vld [vmem:[#allocation19_spill] sm:$0xff] }
 0x21a   : > { %3212 = vtanh.f32 %v1740_v44  ;;  %v3195_v46 = vpop.eup %3194  ;;  %v1754_v4 = vadd.f32 %v4855_v20, %v4211_v43 }
 0x21b   : > { %3214 = vtanh.f32 %v1829_v42  ;;  %v2020_v7 = vmul.f32 %v3195_v46, %v4231_v62 }
 0x21c   : > { %v3197_v36 = vpop.eup %3196  ;;  %3216 = vtanh.f32 %v1742_v50 }
 0x21d   : > { %v3199_v61 = vpop.eup %3198  ;;  %v2376_v6 = vadd.f32 1.0, %v3197_v36  ;;  %3218 = vtanh.f32 %v1831_v55  ;;  %v2201_v18 = vadd.f32 %v2200_v47, %v2020_v7 }
 0x21e   : > { %v3201_v30 = vpop.eup %3200  ;;  %v2375_v5 = vadd.f32 1.0, %v3199_v61  ;;  %3220 = vtanh.f32 %v1746_v24 }
 0x21f   : > { %v3203_v35 = vpop.eup %3202  ;;  %v2407_v27 = vmul.f32 0.6931472, %v3201_v30  ;;  %3222 = vlog2.f32 %v2376_v6 }
 0x220   : > { %v3205_v41 = vpop.eup %3204  ;;  %3224 = vlog2.f32 %v2375_v5  ;;  %v2039_v57 = vmul.f32 %v3203_v35, %v4240_v3 }
 0x221   : > { %v3207_v23 = vpop.eup %3206  ;;  %v2440_v49 = vsel %vm2286_vm11, %v4596_v34, %v2407_v27  ;;  %v2377_v19 = vadd.f32 1.0, %v3205_v41  ;;  %3226 = vtanh.f32 %v1835_v37  ;;  %v4854_v34 = vld [vmem:[#allocation20_spill] sm:$0xff] }
 0x222   : > { %v3209_v47 = vpop.eup %3208  ;;  %v2472_v8 = vmul.f32 0.29552424, %v2440_v49  ;;  %v2175_v60 = vadd.f32 %v2174_v11, %v2039_v57  ;;  %v2041_v56 = vmul.f32 %v3207_v23, %v4240_v3  ;;  %3228 = vtanh.f32 %v1748_v53 }
 0x223   : > { %v3211_v31 = vpop.eup %3210  ;;  %3230 = vlog2.f32 %v2377_v19  ;;  %v2040_v63 = vmul.f32 %v3209_v47, %v4240_v3  ;;  %v1841_v51 = vadd.f32 %v4854_v34, %v4211_v43 }
 0x224   : > { %v3213_v39 = vpop.eup %3212  ;;  %v2474_v16 = vadd.f32 %v2472_v8, %v4621_v54  ;;  %v2176_v45 = vrot.slane %v2175_v60, 4  ;;  %v2193_v9 = vadd.f32 %v2192_v0, %v2041_v56  ;;  %v2042_v11 = vmul.f32 %v3211_v31, %v4240_v3 }
 0x225   : > { %v3215_v17 = vpop.eup %3214  ;;  %v2184_v1 = vadd.f32 %v2183_v40, %v2040_v63  ;;  %3232 = vtanh.f32 %v1837_v32  ;;  %v1977_v0 = vmul.f32 %v3213_v39, %v4223_v13 }
 0x226   : > { %v3217_v44 = vpop.eup %3216  ;;  %v2177_v26 = vadd.f32 %v2176_v45, %v2175_v60  ;;  %v2194_v42 = vrot.slane %v2193_v9, 4  ;;  %v2202_v10 = vadd.f32 %v2201_v18, %v2042_v11  ;;  %v1979_v12 = vmul.f32 %v3215_v17, %v4223_v13 }
 0x227   : > { %v3219_v50 = vpop.eup %3218  ;;  %v2185_v54 = vrot.slane %v2184_v1, 4  ;;  %3234 = vtanh.f32 %v1752_v33  ;;  %v1978_v7 = vmul.f32 %v3217_v44, %v4223_v13 }
 0x228   : > { %v3221_v55 = vpop.eup %3220  ;;  %v2178_v40 = vrot.slane %v2177_v26, 2  ;;  %v2195_v29 = vadd.f32 %v2194_v42, %v2193_v9  ;;  %v2203_v24 = vrot.slane %v2202_v10, 4  ;;  %3236 = vtanh.f32 %v1841_v51 }
 0x229   : > { %v3223_v46 = vpop.eup %3222  ;;  %v2186_v36 = vadd.f32 %v2185_v54, %v2184_v1  ;;  %v1999_v61 = vmul.f32 %v3221_v55, %v4228_v59  ;;  %3238 = vtanh.f32 %v1754_v4 }
 0x22a   : > { %v3225_v6 = vpop.eup %3224  ;;  %v2411_v14 = vmul.f32 0.6931472, %v3223_v46  ;;  %v2179_v37 = vadd.f32 %v2178_v40, %v2177_v26  ;;  %v2196_v30 = vrot.slane %v2195_v29, 2  ;;  %v2204_v5 = vadd.f32 %v2203_v24, %v2202_v10 }
 0x22b   : > { %v3227_v18 = vpop.eup %3226  ;;  %v2409_v21 = vmul.f32 0.6931472, %v3225_v6  ;;  %v2187_v53 = vrot.slane %v2186_v36, 2  ;;  %v2209_v35 = vadd.f32 %v1999_v61, %v1977_v0 }
 0x22c   : > { %v3229_v27 = vpop.eup %3228  ;;  %v2442_v41 = vsel %vm2288_vm12, %v4618_v52, %v2411_v14  ;;  %v2180_v57 = vrot.slane %v2179_v37, 1  ;;  %v2197_v23 = vadd.f32 %v2196_v30, %v2195_v29  ;;  %v2205_v49 = vrot.slane %v2204_v5, 2 }
 0x22d   : > { %v3231_v19 = vpop.eup %3230  ;;  %v2476_v38 = vmul.f32 0.26926672, %v2442_v41  ;;  %v2441_v32 = vsel %vm2287_vm13, %v4628_v58, %v2409_v21  ;;  %v2188_v47 = vadd.f32 %v2187_v53, %v2186_v36  ;;  %v2001_v8 = vmul.f32 %v3227_v18, %v4228_v59  ;;  %v4857_v18 = vld [vmem:[#allocation22_spill] sm:$0xff]  ;;  %v4859_v41 = vld [vmem:[#allocation23_spill] sm:$0xff] }
 0x22e   : > { %v2473_v60 = vmul.f32 0.29552424, %v2441_v32  ;;  %v2413_v56 = vmul.f32 0.6931472, %v3231_v19  ;;  %v2181_v31 = vadd.f32 %v2180_v57, %v2179_v37  ;;  %v2198_v63 = vrot.slane %v2197_v23, 1 }
 0x22f   : > { %v3233_v22 = vpop.eup %3232  ;;  %v4694_v33 = vadd.f32 %v2476_v38, %v2474_v16  ;;  %v2189_v52 = vrot.slane %v2188_v47, 1  ;;  %v2206_v34 = vadd.f32 %v2205_v49, %v2204_v5  ;;  %v2227_v51 = vadd.f32 %v2001_v8, %v1979_v12 }
 0x230   : > { %v2475_v39 = vadd.f32 %v2473_v60, %v4635_v25  ;;  %v2443_v45 = vsel %vm2289_vm14, %v4638_v28, %v2413_v56  ;;  %v4701_v58 = vadd.f32 %v4252_v15, %v2181_v31  ;;  %v2199_v9 = vadd.f32 %v2198_v63, %v2197_v23 }
 0x231   : > { %v2477_v11 = vmul.f32 0.26926672, %v2443_v45  ;;  %v2190_v17 = vadd.f32 %v2189_v52, %v2188_v47  ;;  %v2207_v1 = vrot.slane %v2206_v34, 1  ;;  %v2000_v20 = vmul.f32 %v3229_v27, %v4228_v59  ;;  %v3235_v16 = vpop.eup %3234 }
 0x232   : > { %v2312_v4 = vmin.f32 %v4701_v58, 20.0  ;;  %v4706_v44 = vadd.f32 %v4252_v15, %v2199_v9  ;;  %v1980_v25 = vmul.f32 %v3219_v50, %v4223_v13  ;;  %v2002_v26 = vmul.f32 %v3233_v22, %v4228_v59  ;;  %v3237_v28 = vpop.eup %3236  ;;  %v4856_v59 = vld [vmem:[#allocation21_spill] sm:$0xff] }
 0x233   : > { %v4710_v42 = vadd.f32 %v2477_v11, %v2475_v39  ;;  %v4713_v10 = vadd.f32 %v4252_v15, %v2190_v17  ;;  %v2208_v54 = vadd.f32 %v2207_v1, %v2206_v34  ;;  %v2218_v0 = vadd.f32 %v2000_v20, %v1978_v7  ;;  %v3239_v29 = vpop.eup %3238 }
 0x234   : > { %v2348_v12 = vmul.f32 1.442695, %v2312_v4  ;;  %v2314_v55 = vmin.f32 %v4706_v44, 20.0  ;;  %v2236_v40 = vadd.f32 %v2002_v26, %v1980_v25  ;;  %v2021_v13 = vmul.f32 %v3235_v16, %v4231_v62 }
 0x235   : > { %v2313_v24 = vmin.f32 %v4713_v10, 20.0  ;;  %v4718_v46 = vadd.f32 %v4252_v15, %v2208_v54  ;;  %v1843_v50 = vadd.f32 %v4856_v59, %v4211_v43  ;;  %v2023_v61 = vmul.f32 %v3237_v28, %v4231_v62  ;;  %v4858_v43 = vld [vmem:[#allocation24_spill] sm:$0xff] }
 0x236   : > { %3240 = vpow2.f32 %v2348_v12  ;;  %v2352_v36 = vmul.f32 1.442695, %v2314_v55  ;;  %v2022_v7 = vmul.f32 %v3239_v29, %v4231_v62  ;;  %v2210_v37 = vadd.f32 %v2209_v35, %v2021_v13 }
 0x237   : > { %v2350_v6 = vmul.f32 1.442695, %v2313_v24  ;;  %v2315_v14 = vmin.f32 %v4718_v46, 20.0  ;;  %v2228_v30 = vadd.f32 %v2227_v51, %v2023_v61  ;;  %v1758_v21 = vadd.f32 %v4857_v18, %v4217_v2 }
 0x238   : > { %3242 = vpow2.f32 %v2352_v36  ;;  %v2219_v5 = vadd.f32 %v2218_v0, %v2022_v7  ;;  %v1847_v27 = vadd.f32 %v4858_v43, %v4217_v2  ;;  %v1760_v57 = vadd.f32 %v4859_v41, %v4217_v2 }
 0x239   : > { %3244 = vpow2.f32 %v2350_v6  ;;  %v2354_v53 = vmul.f32 1.442695, %v2315_v14  ;;  %v1849_v23 = vadd.f32 %v4523_v48, %v4217_v2  ;;  %vm2290_vm15 = vcmp.gt.f32.partialorder %v4701_v58, 20.0 }
 0x23a   : > { %3246 = vtanh.f32 %v1843_v50  ;;  %vm2292_vm0 = vcmp.gt.f32.partialorder %v4706_v44, 20.0  ;;  %vm2291_vm1 = vcmp.gt.f32.partialorder %v4713_v10, 20.0  ;;  %vm2293_vm2 = vcmp.gt.f32.partialorder %v4718_v46, 20.0 }
 0x23b   : > { %3248 = vpow2.f32 %v2354_v53 }
 0x23c   : > { %3250 = vtanh.f32 %v1758_v21 }
 0x23d   : > { %3252 = vtanh.f32 %v1847_v27 }
 0x23e   : > { %3254 = vtanh.f32 %v1760_v57 }
 0x23f   : > { %3256 = vtanh.f32 %v1849_v23 }
 0x240   : > { %v3241_v35 = vpop.eup %3240 }
 0x241   : > { %v2378_v49 = vadd.f32 1.0, %v3241_v35 }
 0x242   : > { %v3243_v19 = vpop.eup %3242 }
 0x243   : > { %v3245_v38 = vpop.eup %3244  ;;  %3258 = vlog2.f32 %v2378_v49  ;;  %v2380_v32 = vadd.f32 1.0, %v3243_v19 }
 0x244   : > { %v3247_v47 = vpop.eup %3246  ;;  %v2379_v8 = vadd.f32 1.0, %v3245_v38 }
 0x245   : > { %v3249_v60 = vpop.eup %3248  ;;  %3260 = vlog2.f32 %v2380_v32  ;;  %v2024_v56 = vmul.f32 %v3247_v47, %v4231_v62 }
 0x246   : > { %v3251_v31 = vpop.eup %3250  ;;  %3262 = vlog2.f32 %v2379_v8  ;;  %v2381_v63 = vadd.f32 1.0, %v3249_v60 }
 0x247   : > { %v3253_v2 = vpop.eup %3252  ;;  %v2237_v48 = vadd.f32 %v2236_v40, %v2024_v56  ;;  %v2043_v22 = vmul.f32 %v3251_v31, %v4240_v3 }
 0x248   : > { %v3255_v52 = vpop.eup %3254  ;;  %3264 = vlog2.f32 %v2381_v63  ;;  %v2045_v34 = vmul.f32 %v3253_v2, %v4240_v3 }
 0x249   : > { %v3257_v51 = vpop.eup %3256  ;;  %v2211_v39 = vadd.f32 %v2210_v37, %v2043_v22  ;;  %v2044_v45 = vmul.f32 %v3255_v52, %v4240_v3 }
 0x24a   : > { %v2229_v9 = vadd.f32 %v2228_v30, %v2045_v34  ;;  %v2046_v11 = vmul.f32 %v3257_v51, %v4240_v3 }
 0x24b   : > { %v2212_v17 = vrot.slane %v2211_v39, 4  ;;  %v2220_v62 = vadd.f32 %v2219_v5, %v2044_v45 }
 0x24c   : > { %v2230_v1 = vrot.slane %v2229_v9, 4  ;;  %v2238_v20 = vadd.f32 %v2237_v48, %v2046_v11 }
 0x24d   : > { %v3259_v16 = vpop.eup %3258  ;;  %v2213_v4 = vadd.f32 %v2212_v17, %v2211_v39  ;;  %v2221_v25 = vrot.slane %v2220_v62, 4 }
 0x24e   : > { %v2415_v26 = vmul.f32 0.6931472, %v3259_v16  ;;  %v2231_v28 = vadd.f32 %v2230_v1, %v2229_v9  ;;  %v2239_v54 = vrot.slane %v2238_v20, 4 }
 0x24f   : > { %v3261_v0 = vpop.eup %3260  ;;  %v2214_v12 = vrot.slane %v2213_v4, 2  ;;  %v2222_v55 = vadd.f32 %v2221_v25, %v2220_v62 }
 0x250   : > { %v3263_v3 = vpop.eup %3262  ;;  %v2444_v40 = vsel %vm2290_vm15, %v4701_v58, %v2415_v26  ;;  %v2419_v29 = vmul.f32 0.6931472, %v3261_v0  ;;  %v2232_v24 = vrot.slane %v2231_v28, 2  ;;  %v2240_v13 = vadd.f32 %v2239_v54, %v2238_v20 }
 0x251   : > { %v2480_v59 = vmul.f32 0.21908636, %v2444_v40  ;;  %v2417_v50 = vmul.f32 0.6931472, %v3263_v3  ;;  %v2215_v36 = vadd.f32 %v2214_v12, %v2213_v4  ;;  %v2223_v61 = vrot.slane %v2222_v55, 2 }
 0x252   : > { %v3265_v7 = vpop.eup %3264  ;;  %v2446_v6 = vsel %vm2292_vm0, %v4706_v44, %v2419_v29  ;;  %v2233_v14 = vadd.f32 %v2232_v24, %v2231_v28  ;;  %v2241_v37 = vrot.slane %v2240_v13, 2  ;;  %v3356_v4 = vmov 1966171168  }
 0x253   : > { %v2482_v30 = vadd.f32 %v2480_v59, %v4694_v33  ;;  %v2484_v5 = vmul.f32 0.14945135, %v2446_v6  ;;  %v2445_v58 = vsel %vm2291_vm1, %v4713_v10, %v2417_v50  ;;  %v2421_v18 = vmul.f32 0.6931472, %v3265_v7 }
 0x254   : > { %v2481_v21 = vmul.f32 0.21908636, %v2445_v58  ;;  %v2216_v53 = vrot.slane %v2215_v36, 1  ;;  %v2234_v43 = vrot.slane %v2233_v14, 1  ;;  %v2224_v27 = vadd.f32 %v2223_v61, %v2222_v55  ;;  %v4860_v61 = vld [vmem:[#allocation7_spill] sm:$0xff]  ;;  %v4861_v58 = vld [vmem:[#allocation6_spill] sm:$0xff] }
 0x255   : > { %v2486_v41 = vadd.f32 %v2484_v5, %v2482_v30  ;;  %v2447_v57 = vsel %vm2293_vm2, %v4718_v46, %v2421_v18  ;;  %v2242_v44 = vadd.f32 %v2241_v37, %v2240_v13  ;;  %v2496_v25 = vunpack.c.l.s4 %v3356_v4 }
 0x256   : > { %v2483_v23 = vadd.f32 %v2481_v21, %v4710_v42  ;;  %v2485_v35 = vmul.f32 0.14945135, %v2447_v57  ;;  %v2217_v49 = vadd.f32 %v2216_v53, %v2215_v36  ;;  %v2235_v19 = vadd.f32 %v2234_v43, %v2233_v14  ;;  %v4862_v57 = vld [vmem:[#allocation8_spill] sm:$0xff] }
 0x257   : > { %v2225_v33 = vrot.slane %v2224_v27, 1  ;;  %v2243_v38 = vrot.slane %v2242_v44, 1  ;;  %v2497_v29 = vunpack.c.0.s8 %v2496_v25 }
 0x258   : > { %v2487_v32 = vadd.f32 %v2485_v35, %v2483_v23  ;;  %v2272_v47 = vadd.f32 %v4252_v15, %v2217_v49  ;;  %v2274_v10 = vadd.f32 %v4252_v15, %v2235_v19 }
 0x259   : > { %v2226_v8 = vadd.f32 %v2225_v33, %v2224_v27  ;;  %v2244_v60 = vadd.f32 %v2243_v38, %v2242_v44  ;;  %v2500_v7 = vsub.s32 %v2497_v29, %v4860_v61  ;;  %v4863_v44 = vld [vmem:[#allocation9_spill] sm:$0xff] }
 0x25a   : > { %v2316_v56 = vmin.f32 %v2272_v47, 20.0  ;;  %v2318_v31 = vmin.f32 %v2274_v10, 20.0  ;;  %vm2294_vm3 = vcmp.gt.f32.partialorder %v2272_v47, 20.0  ;;  %vm2296_vm4 = vcmp.gt.f32.partialorder %v2274_v10, 20.0 }
 0x25b   : > { %v2273_v63 = vadd.f32 %v4252_v15, %v2226_v8  ;;  %v2275_v46 = vadd.f32 %v4252_v15, %v2244_v60 }
 0x25c   : > { %v2356_v2 = vmul.f32 1.442695, %v2316_v56  ;;  %v2360_v42 = vmul.f32 1.442695, %v2318_v31 }
 0x25d   : > { %v2317_v48 = vmin.f32 %v2273_v63, 20.0  ;;  %v2319_v22 = vmin.f32 %v2275_v46, 20.0  ;;  %vm2295_vm5 = vcmp.gt.f32.partialorder %v2273_v63, 20.0  ;;  %vm2297_vm6 = vcmp.gt.f32.partialorder %v2275_v46, 20.0 }
 0x25e   : > { %3266 = vpow2.f32 %v2356_v2 }
 0x25f   : > { %3268 = vpow2.f32 %v2360_v42  ;;  %v2358_v52 = vmul.f32 1.442695, %v2317_v48  ;;  %v2362_v34 = vmul.f32 1.442695, %v2319_v22 }
 0x261   : > { %3270 = vpow2.f32 %v2358_v52 }
 0x262   : > { %3272 = vpow2.f32 %v2362_v34 }
 0x268   : > { %v3267_v51 = vpop.eup %3266 }
 0x269   : > { %v3269_v39 = vpop.eup %3268  ;;  %v2382_v45 = vadd.f32 1.0, %v3267_v51  ;;  %v4864_v51 = vlaneseq }
 0x26a   : > { %v2384_v9 = vadd.f32 1.0, %v3269_v39 }
 0x26b   : > { %v3271_v11 = vpop.eup %3270  ;;  %3274 = vlog2.f32 %v2382_v45  ;;  %vm2575_vm7 = vcmp.lt.s32.totalorder %v4864_v51, 256 }
 0x26c   : > { %v3273_v17 = vpop.eup %3272  ;;  %v2383_v62 = vadd.f32 1.0, %v3271_v11  ;;  %3276 = vlog2.f32 %v2384_v9 }
 0x26d   : > { %v2385_v15 = vadd.f32 1.0, %v3273_v17 }
 0x26e   : > { %3278 = vlog2.f32 %v2383_v62 }
 0x26f   : > { %3280 = vlog2.f32 %v2385_v15 }
 0x275   : > { %v3275_v1 = vpop.eup %3274 }
 0x276   : > { %v3277_v20 = vpop.eup %3276  ;;  %v2423_v16 = vmul.f32 0.6931472, %v3275_v1 }
 0x277   : > { %v2427_v26 = vmul.f32 0.6931472, %v3277_v20 }
 0x278   : > { %v3279_v28 = vpop.eup %3278  ;;  %v2448_v54 = vsel %vm2294_vm3, %v2272_v47, %v2423_v16 }
 0x279   : > { %v3281_v0 = vpop.eup %3280  ;;  %v2488_v12 = vmul.f32 0.06667134, %v2448_v54  ;;  %v2425_v55 = vmul.f32 0.6931472, %v3279_v28  ;;  %v2450_v3 = vsel %vm2296_vm4, %v2274_v10, %v2427_v26 }
 0x27a   : > { %v2429_v40 = vmul.f32 0.6931472, %v3281_v0  ;;  %3282 = vlog2.f32 %v2450_v3 }
 0x27b   : > { %v2449_v24 = vsel %vm2295_vm5, %v2273_v63, %v2425_v55  ;;  %v2490_v13 = vadd.f32 %v2488_v12, %v2486_v41 }
 0x27c   : > { %v2489_v59 = vmul.f32 0.06667134, %v2449_v24  ;;  %v2451_v50 = vsel %vm2297_vm6, %v2275_v46, %v2429_v40 }
 0x27d   : > { %3284 = vlog2.f32 %v2451_v50 }
 0x27e   : > { %v2491_v36 = vadd.f32 %v2489_v59, %v2487_v32 }
 0x280   : > { %v2494_v6 = vcombine.low %v2490_v13, %v2491_v36 }
 0x282   : > { %v2501_v14 = vrot.slane %v2494_v6, %v2500_v7 }
 0x284   : > { %v3283_v37 = vpop.eup %3282  ;;  %v2508_v30 = vrot.slane %v2501_v14, %v2500_v7 }
 0x285   : > { %v2521_v5 = vmul.f32 0.6931472, %v3283_v37 }
 0x286   : > { %v2510_v18 = vmul.f32 %v2508_v30, %v4861_v58 }
 0x287   : > { %v3285_v21 = vpop.eup %3284  ;;  %v2524_v53 = vadd.f32 0.6931472, %v2521_v5 }
 0x288   : > { %v2512_v43 = vand.u32 2147483647, %v2510_v18  ;;  %v2523_v27 = vmul.f32 0.6931472, %v3285_v21  ;;  %v2530_v41 = vrot.slane %v2510_v18, %v4862_v57  ;;  %v2534_v23 = vrot.slane %v2510_v18, %v4863_v44 }
 0x289   : > { %v2511_v8 = vmax.f32 %v2510_v18, 0.0 }
 0x28a   : > { %v2513_v35 = vsub.f32 0.0, %v2512_v43  ;;  %v2525_v49 = vadd.f32 0.6931472, %v2523_v27  ;;  %v2537_v19 = vadd.f32 %v2530_v41, %v2524_v53 }
 0x28c   : > { %v2514_v33 = vmul.f32 1.442695, %v2513_v35  ;;  %v2538_v38 = vadd.f32 %v2534_v23, %v2525_v49 }
 0x28e   : > { %3286 = vpow2.f32 %v2514_v33 }
 0x298   : > { %v3287_v32 = vpop.eup %3286 }
 0x299   : > { %v2516_v47 = vadd.f32 1.0, %v3287_v32 }
 0x29b   : > { %3288 = vlog2.f32 %v2516_v47 }
 0x2a5   : > { %v3289_v10 = vpop.eup %3288 }
 0x2a6   : > { %v2518_v60 = vmul.f32 0.6931472, %v3289_v10 }
 0x2a8   : > { %v2519_v56 = vadd.f32 %v2518_v60, %v2511_v8 }
 0x2aa   : > { %v2539_v31 = vmul.f32 2.0, %v2519_v56 }
 0x2ac   : > { %v2544_v63 = vrot.slane %v2539_v31, %v4862_v57  ;;  %v2548_v46 = vrot.slane %v2539_v31, %v4863_v44 }
 0x2ae   : > { %v2551_v2 = vsub.f32 %v2537_v19, %v2544_v63  ;;  %v2552_v42 = vsub.f32 %v2538_v38, %v2548_v46 }
 0x2b0   : > { %v2553_v48 = vsub.f32 0.0, %v2551_v2  ;;  %v2554_v22 = vsub.f32 0.0, %v2552_v42 }
 0x2b2   : > { %v2557_v52 = vcombine.low %v2553_v48, %v2554_v22 }
 0x2b4   : > { %v2564_v34 = vrot.slane %v2557_v52, %v2500_v7 }
 0x2b6   : > { %v2571_v39 = vrot.slane %v2564_v34, %v2500_v7 }
 0x2b8   : > { %2577 = vst.msk [vmem:[%s272_s16] sm:$0x3] %vm2575_vm7, %v2571_v39 }
 0x2b9   : > { %3303 = shalt.err (!%p3300_p3)
}
 0x2ba   : > { %s3304_s25 = scalar_lea.hbm %s4767_s20, 32  ;;  %s3308_s10 = scalar_lea.hbm %s4816_s7, 64 }
 0x2bb   : > { %p3305_p4 = scmp.ne.s32.totalorder %s4767_s20, %s3304_s25  ;;  %p3309_p9 = scmp.lt.u32.totalorder %s4767_s20, %s4816_s7 }
 0x2bc   : > { %p3310_p10 = scmp.lt.u32.totalorder %s3308_s10, %s3304_s25  ;;  %p3312_p12 = scmp.lt.u32.totalorder %s3304_s25, %s4767_s20 }
 0x2bd   : > { %p3306_p7 = pnand %p3305_p4, %p3439_p5 }
 0x2be   : > { %p3311_p11 = por %p3310_p10, %p3309_p9 }
 0x2bf   : > { %p3307_p8 = pneg %p3306_p7 }
 0x2c0   : > { %p3313_p13 = por %p3312_p12, %p3311_p11 }
 0x2c2   : > { %p3314_p0 = pnand %p3313_p13, %p3307_p8 }
 0x2c4   : > { %3317 = shalt.err (!%p3314_p0)
}
 0x2c5   : > { %2798 = dma.vmem_to_hbm [thread:$0]  (%p3439_p5), %s4769_s17, 32, %s4767_s20, %s2579_s21  }
 0x2c6 PF: > { %p2804_p1 = scmp.ge.s32.totalorder %s3352_s29, 2  ;;  %s2605_s16 = sand.u32 1, %s3340_s26  }
 0x2c7   : > { %s2606_s18 = scalar_lea.sflag [#allocation4], %s2605_s16 }
 0x2c8   : > { %p2801_p2 = pnand %p2804_p1, %p3443_p6 }
 0x2ca   : > { %3335 = dma.done.wait (!%p2801_p2), %s2606_s18, 32  }
 0x2cb   : > { %3337 = vsyncadd (!%p2801_p2), %s2606_s18, 4294967264  ;;  %p19_p3 = scmp.ge.s32.totalorder %s3426_s8, 4   ;;  %s4865_s26 = smov %s3344_s27 }
 0x2cc   : > { %s4866_s27 = smov %s3348_s28  ;;  %s4867_s28 = smov %s3437_s11 }
 0x2cd   : > { %s4868_s29 = smov %s3426_s8  ;;  %21 = sbr.rel (!%p19_p3) target bundleno = 6 (0x6), region = 83 }
 0x2d4   :  { %2611 = vsyncpa [#allocation4], 1 }
 0x2d5   :  { %2613 = vsyncpa [#allocation4 + $0x1], 1 }

</bundles_post_ra>
